<compile_context>
chip_gen: v7x
topology: tpu7x:2x2x1
jax: 0.10.0
libtpu: 0.0.40
codegen_flags: <defaults>
</compile_context>

<pallas_src>
import jax
import jax.numpy as jnp
from jax.experimental import pallas as pl
from jax.experimental.pallas import tpu as pltpu

IN_DIM = 28 * 28   # 784
HID = 512
OUT_DIM = 10
OUT_PAD = 128      # lane-dense padded logits width


def mlp_kernel(x_ref, w1_ref, b1_ref, w2_ref, b2_ref, w3_ref, b3_ref, o_ref):
    # x_ref: (TB, 784) bf16; w*: bf16 (in, out); b*: f32 (1, out); o_ref: (TB, 128) f32
    x = x_ref[...]
    h1 = jnp.dot(x, w1_ref[...], preferred_element_type=jnp.float32) + b1_ref[...]
    h1 = jnp.maximum(h1, 0.0)                                  # ReLU on f32 accumulator
    h2 = jnp.dot(h1.astype(jnp.bfloat16), w2_ref[...],
                 preferred_element_type=jnp.float32) + b2_ref[...]
    h2 = jnp.maximum(h2, 0.0)
    logits = jnp.dot(h2.astype(jnp.bfloat16), w3_ref[...],
                     preferred_element_type=jnp.float32) + b3_ref[...]
    o_ref[...] = logits.astype(o_ref.dtype)                    # (TB, 128), lane-dense store


def neutral_network_forward(x, params, *, batch_tile=256):
    """x: (B, 28, 28) float32. Returns logits (B, 10) float32."""
    w1, b1, w2, b2, w3p, b3p = params
    B = x.shape[0]
    x_flat = x.reshape(B, IN_DIM).astype(jnp.bfloat16)   # nn.Flatten (glue) + bf16 feed

    if B <= batch_tile:
        # Single invocation: no grid, everything VMEM-resident, no double buffering.
        vmem = pl.BlockSpec(memory_space=pltpu.MemorySpace.VMEM)
        out_pad = pl.pallas_call(
            mlp_kernel,
            out_shape=jax.ShapeDtypeStruct((B, OUT_PAD), jnp.float32),
            in_specs=[vmem] * 7,
            out_specs=vmem,
        )(x_flat, w1, b1, w2, b2, w3p, b3p)
        return out_pad[:, :OUT_DIM]

    # Batch-tiled path: weights/biases stay VMEM-resident across all batch tiles.
    TB = batch_tile
    Bp = ((B + TB - 1) // TB) * TB
    if Bp != B:
        x_flat = jnp.pad(x_flat, ((0, Bp - B), (0, 0)))
    resident = lambda shape: pl.BlockSpec(shape, lambda i: (0, 0))
    out_pad = pl.pallas_call(
        mlp_kernel,
        out_shape=jax.ShapeDtypeStruct((Bp, OUT_PAD), jnp.float32),
        grid=(Bp // TB,),
        in_specs=[
            pl.BlockSpec((TB, IN_DIM), lambda i: (i, 0)),
            resident((IN_DIM, HID)), resident((1, HID)),
            resident((HID, HID)),    resident((1, HID)),
            resident((HID, OUT_PAD)), resident((1, OUT_PAD)),
        ],
        out_specs=pl.BlockSpec((TB, OUT_PAD), lambda i: (i, 0)),
        compiler_params=pltpu.CompilerParams(
            dimension_semantics=("parallel",)),   # both TCs on v7x
    )(x_flat, w1, b1, w2, b2, w3p, b3p)
    return out_pad[:B, :OUT_DIM]


def init_params(key):
    """Deterministic synthetic init; layers stored as (in, out); bf16 weights, f32 biases."""
    k1, k2, k3, k4, k5, k6 = jax.random.split(key, 6)

    def u(k, shape, fan_in):
        bound = 1.0 / jnp.sqrt(fan_in)
        return jax.random.uniform(k, shape, jnp.float32, -bound, bound)

    w1 = u(k1, (IN_DIM, HID), IN_DIM).astype(jnp.bfloat16)
    b1 = u(k2, (1, HID), IN_DIM)                       # f32
    w2 = u(k3, (HID, HID), HID).astype(jnp.bfloat16)
    b2 = u(k4, (1, HID), HID)
    w3 = u(k5, (HID, OUT_DIM), HID).astype(jnp.bfloat16)
    b3 = u(k6, (1, OUT_DIM), HID)
    # Zero-pad the last layer to a lane-dense 128-wide output.
    w3p = jnp.zeros((HID, OUT_PAD), jnp.bfloat16).at[:, :OUT_DIM].set(w3)
    b3p = jnp.zeros((1, OUT_PAD), jnp.float32).at[:, :OUT_DIM].set(b3)
    return (w1, b1, w2, b2, w3p, b3p)


def reference_forward(x, params):
    """Pure-JAX reference with identical dtypes (bf16 inputs, f32 accumulation)."""
    w1, b1, w2, b2, w3p, b3p = params
    h = x.reshape(x.shape[0], -1).astype(jnp.bfloat16)
    h = jnp.maximum(jnp.dot(h, w1, preferred_element_type=jnp.float32) + b1, 0.0)
    h = jnp.maximum(jnp.dot(h.astype(jnp.bfloat16), w2,
                            preferred_element_type=jnp.float32) + b2, 0.0)
    logits = jnp.dot(h.astype(jnp.bfloat16), w3p,
                     preferred_element_type=jnp.float32) + b3p
    return logits[:, :OUT_DIM]


if __name__ == "__main__":
    key = jax.random.PRNGKey(0)
    kx, kp = jax.random.split(key)
    params = init_params(kp)

    # Matches torch.rand(3, 28, 28) fed to NeutralNetwork.forward (untiled path).
    x = jax.random.uniform(kx, (3, 28, 28), jnp.float32)
    logits = jax.block_until_ready(neutral_network_forward(x, params))
    ref = reference_forward(x, params)
    assert logits.shape == (3, OUT_DIM)
    assert jnp.allclose(logits, ref, atol=2e-3, rtol=2e-3), \
        float(jnp.max(jnp.abs(logits - ref)))

    # Exercise the batch-tiled (grid, resident-weights) path too.
    xb = jax.random.uniform(jax.random.PRNGKey(1), (300, 28, 28), jnp.float32)
    logits_b = jax.block_until_ready(
        neutral_network_forward(xb, params, batch_tile=128))
    ref_b = reference_forward(xb, params)
    assert logits_b.shape == (300, OUT_DIM)
    assert jnp.allclose(logits_b, ref_b, atol=2e-3, rtol=2e-3), \
        float(jnp.max(jnp.abs(logits_b - ref_b)))

    print("KERNEL_OK")
</pallas_src>

<mosaic_0001>
module attributes {stable_mosaic.version = 11 : i64} {
  func.func @mlp_kernel(%arg0: memref<3x784xbf16, #tpu.memory_space<vmem>>, %arg1: memref<784x512xbf16, #tpu.memory_space<vmem>>, %arg2: memref<1x512xf32, #tpu.memory_space<vmem>>, %arg3: memref<512x512xbf16, #tpu.memory_space<vmem>>, %arg4: memref<1x512xf32, #tpu.memory_space<vmem>>, %arg5: memref<512x128xbf16, #tpu.memory_space<vmem>>, %arg6: memref<1x128xf32, #tpu.memory_space<vmem>>, %arg7: memref<3x128xf32, #tpu.memory_space<vmem>>) attributes {dimension_semantics = [], scalar_prefetch = 0 : i64, scratch_operands = 0 : i64, tpu.core_type = #tpu.core_type<tc>} {
    %c0 = arith.constant 0 : index
    %c0_0 = arith.constant 0 : index
    %0 = vector.load %arg0[%c0, %c0_0] : memref<3x784xbf16, #tpu.memory_space<vmem>>, vector<3x784xbf16>
    %c0_1 = arith.constant 0 : index
    %c0_2 = arith.constant 0 : index
    %1 = vector.load %arg1[%c0_1, %c0_2] : memref<784x512xbf16, #tpu.memory_space<vmem>>, vector<784x512xbf16>
    %cst = arith.constant dense<0.000000e+00> : vector<3x512xf32>
    %2 = tpu.matmul %0, %1, %cst {dimension_numbers = #tpu.dot_dimension_numbers<[1], [0], [0], [1], [0, 0, 1, 1], [], []>} : vector<3x784xbf16>, vector<784x512xbf16>, vector<3x512xf32> -> vector<3x512xf32>
    %c0_3 = arith.constant 0 : index
    %c0_4 = arith.constant 0 : index
    %3 = vector.load %arg2[%c0_3, %c0_4] : memref<1x512xf32, #tpu.memory_space<vmem>>, vector<1x512xf32>
    %4 = vector.broadcast %3 : vector<1x512xf32> to vector<3x512xf32>
    %5 = arith.addf %2, %4 : vector<3x512xf32>
    %cst_5 = arith.constant 0.000000e+00 : f32
    %6 = vector.broadcast %cst_5 : f32 to vector<3x512xf32>
    %7 = arith.maximumf %5, %6 : vector<3x512xf32>
    %8 = arith.truncf %7 : vector<3x512xf32> to vector<3x512xbf16>
    %c0_6 = arith.constant 0 : index
    %c0_7 = arith.constant 0 : index
    %9 = vector.load %arg3[%c0_6, %c0_7] : memref<512x512xbf16, #tpu.memory_space<vmem>>, vector<512x512xbf16>
    %cst_8 = arith.constant dense<0.000000e+00> : vector<3x512xf32>
    %10 = tpu.matmul %8, %9, %cst_8 {dimension_numbers = #tpu.dot_dimension_numbers<[1], [0], [0], [1], [0, 0, 1, 1], [], []>} : vector<3x512xbf16>, vector<512x512xbf16>, vector<3x512xf32> -> vector<3x512xf32>
    %c0_9 = arith.constant 0 : index
    %c0_10 = arith.constant 0 : index
    %11 = vector.load %arg4[%c0_9, %c0_10] : memref<1x512xf32, #tpu.memory_space<vmem>>, vector<1x512xf32>
    %12 = vector.broadcast %11 : vector<1x512xf32> to vector<3x512xf32>
    %13 = arith.addf %10, %12 : vector<3x512xf32>
    %cst_11 = arith.constant 0.000000e+00 : f32
    %14 = vector.broadcast %cst_11 : f32 to vector<3x512xf32>
    %15 = arith.maximumf %13, %14 : vector<3x512xf32>
    %16 = arith.truncf %15 : vector<3x512xf32> to vector<3x512xbf16>
    %c0_12 = arith.constant 0 : index
    %c0_13 = arith.constant 0 : index
    %17 = vector.load %arg5[%c0_12, %c0_13] : memref<512x128xbf16, #tpu.memory_space<vmem>>, vector<512x128xbf16>
    %cst_14 = arith.constant dense<0.000000e+00> : vector<3x128xf32>
    %18 = tpu.matmul %16, %17, %cst_14 {dimension_numbers = #tpu.dot_dimension_numbers<[1], [0], [0], [1], [0, 0, 1, 1], [], []>} : vector<3x512xbf16>, vector<512x128xbf16>, vector<3x128xf32> -> vector<3x128xf32>
    %c0_15 = arith.constant 0 : index
    %c0_16 = arith.constant 0 : index
    %19 = vector.load %arg6[%c0_15, %c0_16] : memref<1x128xf32, #tpu.memory_space<vmem>>, vector<1x128xf32>
    %20 = vector.broadcast %19 : vector<1x128xf32> to vector<3x128xf32>
    %21 = arith.addf %18, %20 : vector<3x128xf32>
    %c0_17 = arith.constant 0 : index
    %c0_18 = arith.constant 0 : index
    %22 = vector.load %arg7[%c0_17, %c0_18] : memref<3x128xf32, #tpu.memory_space<vmem>>, vector<3x128xf32>
    tpu.vector_store %arg7[%c0_17, %c0_18], %21 {strides = array<i32>} : memref<3x128xf32, #tpu.memory_space<vmem>>, vector<3x128xf32>,
    return
  }
}

</mosaic_0001>

<bundles_post_ra>
// kernel: tpu_custom_call.1
= control target key start
LH: loop header
LB: loop body
LE: loop exit
PB: predicated region body
PF: predicated region fallthrough
CT: control target
= control target key end

     0   :  { %12 = vsyncpa [#allocation3], 0  ;;  %s4258_s0 = inlined_call_operand.hbm [shape: bf16[3,784], index: 0, kind: input, shape index: {}]   ;;  %s4259_s1 = inlined_call_operand.hbm [shape: bf16[784,512], index: 1, kind: input, shape index: {}]   ;;  %s4260_s2 = inlined_call_operand.vmem [shape: f32[1,512], index: 2, kind: input, shape index: {}]   ;;  %s4261_s3 = inlined_call_operand.hbm [shape: bf16[512,512], index: 3, kind: input, shape index: {}]   ;;  %s4262_s4 = inlined_call_operand.vmem [shape: f32[1,512], index: 4, kind: input, shape index: {}]   ;;  %s4263_s5 = inlined_call_operand.hbm [shape: bf16[512,128], index: 5, kind: input, shape index: {}]   ;;  %s4264_s6 = inlined_call_operand.vmem [shape: f32[1,128], index: 6, kind: input, shape index: {}]   ;;  %s4265_s7 = inlined_call_operand.hbm [shape: f32[3,128], index: 7, kind: output, shape index: {}]  }
   0x1   :  { %13 = vsyncpa [#allocation6], 0 }
   0x2   :  { %14 = vsyncpa [#allocation9], 0 }
   0x3   :  { %15 = vsyncpa [#allocation4], 0  ;;  %s4077_s24 = smov [#allocation5]   ;;  %s3959_s28 = scalar_lea.hbm %s4259_s1, 25088 }
   0x4   :  { %s31_s25 = sshll.u32 %s4077_s24, 4  ;;  %p3960_p0 = scmp.ne.s32.totalorder %s4259_s1, %s3959_s28  ;;  %s32_s25 = int_to_ptr.vmem [resolvable:$true] %s31_s25 }
   0x5   :  { %p3963_p1 = scmp.lt.u32.totalorder %s3959_s28, %s4259_s1 }
   0x7   :  { %p3965_p2 = pnand %p3963_p1, %p3960_p0 }
   0x9   :  { %3968 = shalt.err (!%p3965_p2)
}
   0xa   :  { %s3969_s10 = scalar_lea.vmem %s32_s25, 25088  ;;  %p3974_p4 = scmp.lt.s32.totalorder %s32_s25, %s32_s25 }
   0xb   :  { %p3970_p3 = scmp.ne.s32.totalorder %s32_s25, %s3969_s10  ;;  %p3975_p5 = scmp.lt.s32.totalorder %s3969_s10, %s3969_s10 }
   0xd   :  { %p3976_p6 = por %p3975_p5, %p3974_p4 }
   0xf   :  { %p3977_p7 = pnand %p3976_p6, %p3970_p3 }
  0x11   :  { %3980 = shalt.err (!%p3977_p7)
}
  0x12   :  { %s4078_s11 = smov 256   ;;  %s4079_s12 = smov 16  }
  0x13   :  { %37 = dma.hbm_to_vmem [thread:$0]  %s4259_s1, 25088, %s32_s25, [#allocation6], %s4078_s11, %s4078_s11, %s4079_s12  }
  0x14   :  { %s4080_s15 = smov [#allocation2]   ;;  %s4081_s17 = smov [#allocation7]  }
  0x15   :  { %s22_s16 = sshll.u32 %s4080_s15, 4  ;;  %s45_s18 = sshll.u32 %s4081_s17, 4  ;;  %s23_s16 = int_to_ptr.vmem [resolvable:$true] %s22_s16  ;;  %s46_s18 = int_to_ptr.vmem [resolvable:$true] %s45_s18 }
  0x16   :  { %s3981_s21 = scalar_lea.hbm %s4258_s0, 224 }
  0x17   :  { %p3982_p8 = scmp.ne.s32.totalorder %s4258_s0, %s3981_s21  ;;  %p3985_p9 = scmp.lt.u32.totalorder %s3981_s21, %s4258_s0 }
  0x19   :  { %p3987_p10 = pnand %p3985_p9, %p3982_p8 }
  0x1b   :  { %3990 = shalt.err (!%p3987_p10)
}
  0x1c   :  { %s3991_s1 = scalar_lea.vmem %s23_s16, 224  ;;  %p3996_p12 = scmp.lt.s32.totalorder %s23_s16, %s23_s16 }
  0x1d   :  { %p3992_p11 = scmp.ne.s32.totalorder %s23_s16, %s3991_s1  ;;  %p3997_p13 = scmp.lt.s32.totalorder %s3991_s1, %s3991_s1 }
  0x1f   :  { %p3998_p0 = por %p3997_p13, %p3996_p12 }
  0x21   :  { %p3999_p1 = pnand %p3998_p0, %p3992_p11 }
  0x23   :  { %4002 = shalt.err (!%p3999_p1)
}
  0x24   :  { %25 = dma.hbm_to_vmem [thread:$0]  %s4258_s0, 224, %s23_s16, [#allocation3]  }
  0x25   :  { %s4003_s30 = scalar_lea.hbm %s4261_s3, 16384 }
  0x26   :  { %p4004_p2 = scmp.ne.s32.totalorder %s4261_s3, %s4003_s30  ;;  %p4007_p3 = scmp.lt.u32.totalorder %s4003_s30, %s4261_s3 }
  0x28   :  { %p4009_p4 = pnand %p4007_p3, %p4004_p2 }
  0x2a   :  { %4012 = shalt.err (!%p4009_p4)
}
  0x2b   :  { %s4013_s14 = scalar_lea.vmem %s46_s18, 16384  ;;  %p4018_p6 = scmp.lt.s32.totalorder %s46_s18, %s46_s18 }
  0x2c   :  { %p4014_p5 = scmp.ne.s32.totalorder %s46_s18, %s4013_s14  ;;  %p4019_p7 = scmp.lt.s32.totalorder %s4013_s14, %s4013_s14 }
  0x2e   :  { %p4020_p8 = por %p4019_p7, %p4018_p6 }
  0x30   :  { %p4021_p9 = pnand %p4020_p8, %p4014_p5 }
  0x32   :  { %4024 = shalt.err (!%p4021_p9)
}
  0x33   :  { %51 = dma.hbm_to_vmem [thread:$0]  %s4261_s3, 16384, %s46_s18, [#allocation6], %s4078_s11, %s4078_s11, %s4079_s12  }
  0x34   :  { %s4082_s16 = smov [#allocation8]   ;;  %s4025_s21 = scalar_lea.hbm %s4263_s5, 4096 }
  0x35   :  { %s59_s17 = sshll.u32 %s4082_s16, 4  ;;  %p4026_p10 = scmp.ne.s32.totalorder %s4263_s5, %s4025_s21  ;;  %s60_s17 = int_to_ptr.vmem [resolvable:$true] %s59_s17 }
  0x36   :  { %p4029_p11 = scmp.lt.u32.totalorder %s4025_s21, %s4263_s5 }
  0x38   :  { %p4031_p12 = pnand %p4029_p11, %p4026_p10 }
  0x3a   :  { %4034 = shalt.err (!%p4031_p12)
}
  0x3b   :  { %s4035_s1 = scalar_lea.vmem %s60_s17, 4096  ;;  %p4040_p0 = scmp.lt.s32.totalorder %s60_s17, %s60_s17 }
  0x3c   :  { %p4036_p13 = scmp.ne.s32.totalorder %s60_s17, %s4035_s1  ;;  %p4041_p1 = scmp.lt.s32.totalorder %s4035_s1, %s4035_s1 }
  0x3e   :  { %p4042_p2 = por %p4041_p1, %p4040_p0 }
  0x40   :  { %p4043_p3 = pnand %p4042_p2, %p4036_p13 }
  0x42   :  { %4046 = shalt.err (!%p4043_p3)
}
  0x43   :  { %s4083_s3 = smov 64   ;;  %s4084_s11 = smov 4  }
  0x44   :  { %65 = dma.hbm_to_vmem [thread:$0]  %s4263_s5, 4096, %s60_s17, [#allocation9], %s4083_s3, %s4083_s3, %s4084_s11  }
  0x45   :  { %4069 = dma.done.wait [#allocation3], 224  }
  0x46   :  { %4070 = vsyncadd [#allocation3], 4294967072 }
  0x47   :  { %4071 = dma.done.wait [#allocation6], 41472  }
  0x48   :  { %4072 = vsyncadd [#allocation6], 4294925824 }
  0x49   :  { %4073 = dma.done.wait [#allocation9], 4096  }
  0x4a   :  { %4074 = vsyncadd [#allocation9], 4294963200  ;;  %v3439_v0 = vld [vmem:[#allocation5 + $0x4] ss:$16 sps:$4 sm:$0xff]   ;;  %v3441_v1 = vld [vmem:[#allocation5 + $0xc] ss:$16 sps:$4 sm:$0xff]   ;;  %v281_v36 = vlaneseq }
  0x4b   :  { %1326 = vmatprep.subr.bf16.mxu0 %v3439_v0  ;;  %v3443_v2 = vld [vmem:[#allocation5] ss:$16 sps:$4 sm:$0xff]   ;;  %v3444_v3 = vld [vmem:[#allocation5 + $0x8] ss:$16 sps:$4 sm:$0xff]   ;;  %1490 = vmatprep.subr.bf16.mxu1 %v3441_v1  ;;  %v3445_v4 = vld [vmem:[#allocation5 + $0x24] ss:$16 sps:$4 sm:$0xff]  }
  0x4c   :  { %1327 = vmatpush1.bf16.msra.mxu0 %v3443_v2  ;;  %1491 = vmatpush1.bf16.msra.mxu1 %v3444_v3  ;;  %v3447_v5 = vld [vmem:[#allocation5 + $0x2c] ss:$16 sps:$4 sm:$0xff]   ;;  %v3449_v6 = vld [vmem:[#allocation5 + $0x20] ss:$16 sps:$4 sm:$0xff]   ;;  %v3450_v7 = vld [vmem:[#allocation5 + $0x28] ss:$16 sps:$4 sm:$0xff]  }
  0x4d   :  { %1328 = vmatprep.subr.bf16.mxu0 %v3445_v4  ;;  %1492 = vmatprep.subr.bf16.mxu1 %v3447_v5  ;;  %v3451_v8 = vld [vmem:[#allocation5 + $0x44] ss:$16 sps:$4 sm:$0xff]   ;;  %v3453_v9 = vld [vmem:[#allocation5 + $0x4c] ss:$16 sps:$4 sm:$0xff]   ;;  %v3455_v10 = vld [vmem:[#allocation5 + $0x40] ss:$16 sps:$4 sm:$0xff]  }
  0x4e   :  { %v3456_v11 = vld [vmem:[#allocation5 + $0x48] ss:$16 sps:$4 sm:$0xff]   ;;  %v3457_v12 = vld [vmem:[#allocation5 + $0x64] ss:$16 sps:$4 sm:$0xff]   ;;  %v3459_v13 = vld [vmem:[#allocation5 + $0x6c] ss:$16 sps:$4 sm:$0xff]  }
  0x4f   :  { %v3461_v14 = vld [vmem:[#allocation5 + $0x60] ss:$16 sps:$4 sm:$0xff]   ;;  %v3462_v15 = vld [vmem:[#allocation5 + $0x68] ss:$16 sps:$4 sm:$0xff]   ;;  %v3463_v16 = vld [vmem:[#allocation5 + $0x84] ss:$16 sps:$4 sm:$0xff]  }
  0x50   :  { %1329 = vmatpush1.bf16.msra.mxu0 %v3449_v6  ;;  %1493 = vmatpush1.bf16.msra.mxu1 %v3450_v7  ;;  %v3465_v17 = vld [vmem:[#allocation5 + $0x8c] ss:$16 sps:$4 sm:$0xff]   ;;  %v3467_v18 = vld [vmem:[#allocation5 + $0x80] ss:$16 sps:$4 sm:$0xff]   ;;  %v3468_v19 = vld [vmem:[#allocation5 + $0x88] ss:$16 sps:$4 sm:$0xff]  }
  0x51   :  { %1330 = vmatprep.subr.bf16.mxu0 %v3451_v8  ;;  %1494 = vmatprep.subr.bf16.mxu1 %v3453_v9  ;;  %v3469_v20 = vld [vmem:[#allocation5 + $0xa4] ss:$16 sps:$4 sm:$0xff]   ;;  %v3471_v21 = vld [vmem:[#allocation5 + $0xac] ss:$16 sps:$4 sm:$0xff]   ;;  %v3473_v22 = vld [vmem:[#allocation5 + $0xa0] ss:$16 sps:$4 sm:$0xff]  }
  0x52   :  { %v3474_v23 = vld [vmem:[#allocation5 + $0xa8] ss:$16 sps:$4 sm:$0xff]   ;;  %v3475_v24 = vld [vmem:[#allocation5 + $0xc4] ss:$16 sps:$4 sm:$0xff]   ;;  %v3477_v25 = vld [vmem:[#allocation5 + $0xcc] ss:$16 sps:$4 sm:$0xff]  }
  0x53   :  { %v3479_v26 = vld [vmem:[#allocation5 + $0xc0] ss:$16 sps:$4 sm:$0xff]   ;;  %v3480_v27 = vld [vmem:[#allocation5 + $0xc8] ss:$16 sps:$4 sm:$0xff]   ;;  %v3481_v28 = vld [vmem:[#allocation5 + $0xe4] ss:$16 sps:$4 sm:$0xff]  }
  0x54   :  { %1331 = vmatpush1.bf16.msra.mxu0 %v3455_v10  ;;  %1495 = vmatpush1.bf16.msra.mxu1 %v3456_v11  ;;  %v3483_v29 = vld [vmem:[#allocation5 + $0xec] ss:$16 sps:$4 sm:$0xff]   ;;  %v3485_v30 = vld [vmem:[#allocation5 + $0xe0] ss:$16 sps:$4 sm:$0xff]   ;;  %v3486_v31 = vld [vmem:[#allocation5 + $0xe8] ss:$16 sps:$4 sm:$0xff]  }
  0x55   :  { %1332 = vmatprep.subr.bf16.mxu0 %v3457_v12  ;;  %1496 = vmatprep.subr.bf16.mxu1 %v3459_v13  ;;  %v3487_v32 = vld [vmem:[#allocation5 + $0x104] ss:$16 sps:$4 sm:$0xff]   ;;  %v3489_v33 = vld [vmem:[#allocation5 + $0x10c] ss:$16 sps:$4 sm:$0xff]   ;;  %v3491_v34 = vld [vmem:[#allocation5 + $0x100] ss:$16 sps:$4 sm:$0xff]  }
  0x56   :  { %v3492_v35 = vld [vmem:[#allocation5 + $0x108] ss:$16 sps:$4 sm:$0xff]   ;;  %v4085_v37 = vmov 1983009808   ;;  %v3493_v39 = vld [vmem:[#allocation5 + $0x124] ss:$16 sps:$4 sm:$0xff]  }
  0x57   :  { %v305_v38 = vunpack.c.l.s4 %v4085_v37  ;;  %v3495_v40 = vld [vmem:[#allocation5 + $0x12c] ss:$16 sps:$4 sm:$0xff]   ;;  %v3497_v41 = vld [vmem:[#allocation5 + $0x120] ss:$16 sps:$4 sm:$0xff]   ;;  %v4182_v42 = vshrl.u32 %v281_v36, 7  ;;  %vm1322_vm0 = vcmask 130048  }
  0x58   :  { %1333 = vmatpush1.bf16.msra.mxu0 %v3461_v14  ;;  %1497 = vmatpush1.bf16.msra.mxu1 %v3462_v15  ;;  %v3498_v44 = vld [vmem:[#allocation5 + $0x128] ss:$16 sps:$4 sm:$0xff]   ;;  %v3499_v45 = vld [vmem:[#allocation5 + $0x144] ss:$16 sps:$4 sm:$0xff]   ;;  %v3501_v46 = vld [vmem:[#allocation5 + $0x14c] ss:$16 sps:$4 sm:$0xff]  }
  0x59   :  { %1334 = vmatprep.subr.bf16.mxu0 %v3463_v16  ;;  %1498 = vmatprep.subr.bf16.mxu1 %v3465_v17  ;;  %v306_v43 = vunpack.c.0.s8 %v305_v38  ;;  %v3503_v47 = vld [vmem:[#allocation5 + $0x140] ss:$16 sps:$4 sm:$0xff]   ;;  %v3504_v48 = vld [vmem:[#allocation5 + $0x148] ss:$16 sps:$4 sm:$0xff]   ;;  %v3505_v50 = vld [vmem:[#allocation5 + $0x164] ss:$16 sps:$4 sm:$0xff]  }
  0x5a   :  { %v3507_v51 = vld [vmem:[#allocation5 + $0x16c] ss:$16 sps:$4 sm:$0xff]   ;;  %v81_v52 = vld [vmem:[#allocation2] sm:$0xff]  ;;  %s4087_s29 = smov [#allocation10]  }
  0x5b   :  { %v4185_v49 = vsub.s32 %v306_v43, %v4182_v42  ;;  %v3509_v53 = vld [vmem:[#allocation5 + $0x160] ss:$16 sps:$4 sm:$0xff]   ;;  %v3510_v55 = vld [vmem:[#allocation5 + $0x168] ss:$16 sps:$4 sm:$0xff]   ;;  %v3511_v56 = vld [vmem:[#allocation5 + $0x184] ss:$16 sps:$4 sm:$0xff]   ;;  %v303_v7 = vcombine.high %v81_v52, %v81_v52 }
  0x5c   :  { %1335 = vmatpush1.bf16.msra.mxu0 %v3467_v18  ;;  %1499 = vmatpush1.bf16.msra.mxu1 %v3468_v19  ;;  %v3513_v57 = vld [vmem:[#allocation5 + $0x18c] ss:$16 sps:$4 sm:$0xff]   ;;  %v3515_v59 = vld [vmem:[#allocation5 + $0x180] ss:$16 sps:$4 sm:$0xff]   ;;  %v3516_v60 = vld [vmem:[#allocation5 + $0x188] ss:$16 sps:$4 sm:$0xff]  }
  0x5d   :  { %1336 = vmatprep.subr.bf16.mxu0 %v3469_v20  ;;  %1500 = vmatprep.subr.bf16.mxu1 %v3471_v21  ;;  %v310_v54 = vrot.slane %v81_v52, %v4185_v49  ;;  %v3517_v61 = vld [vmem:[#allocation5 + $0x1a4] ss:$16 sps:$4 sm:$0xff]   ;;  %v3519_v62 = vld [vmem:[#allocation5 + $0x1ac] ss:$16 sps:$4 sm:$0xff]   ;;  %v3521_v63 = vld [vmem:[#allocation5 + $0x1a0] ss:$16 sps:$4 sm:$0xff]   ;;  %v4189_v12 = vrot.slane %v303_v7, %v4185_v49 }
  0x5e   :  { %v3522_v0 = vld [vmem:[#allocation5 + $0x1a8] ss:$16 sps:$4 sm:$0xff]   ;;  %v3523_v1 = vld [vmem:[#allocation5 + $0x1c4] ss:$16 sps:$4 sm:$0xff]   ;;  %v3525_v2 = vld [vmem:[#allocation5 + $0x1cc] ss:$16 sps:$4 sm:$0xff]  }
  0x5f   :  { %v318_v58 = vcombine.high %v310_v54, %v310_v54  ;;  %v3527_v3 = vld [vmem:[#allocation5 + $0x1c0] ss:$16 sps:$4 sm:$0xff]   ;;  %v3528_v4 = vld [vmem:[#allocation5 + $0x1c8] ss:$16 sps:$4 sm:$0xff]   ;;  %v3529_v5 = vld [vmem:[#allocation5 + $0x1e4] ss:$16 sps:$4 sm:$0xff]   ;;  %v319_v17 = vcombine.high %v4189_v12, %v4189_v12 }
  0x60   :  { %1337 = vmatpush1.bf16.msra.mxu0 %v3473_v22  ;;  %1501 = vmatpush1.bf16.msra.mxu1 %v3474_v23  ;;  %v3531_v6 = vld [vmem:[#allocation5 + $0x1ec] ss:$16 sps:$4 sm:$0xff]   ;;  %v3533_v8 = vld [vmem:[#allocation5 + $0x1e0] ss:$16 sps:$4 sm:$0xff]   ;;  %v3534_v9 = vld [vmem:[#allocation5 + $0x1e8] ss:$16 sps:$4 sm:$0xff]  }
  0x61   :  { %1338 = vmatprep.subr.bf16.mxu0 %v3475_v24  ;;  %1502 = vmatprep.subr.bf16.mxu1 %v3477_v25  ;;  %v3538_v10 = vld [vmem:[#allocation5 + $0x204] ss:$16 sps:$4 sm:$0xff]   ;;  %v3541_v11 = vld [vmem:[#allocation5 + $0x20c] ss:$16 sps:$4 sm:$0xff]   ;;  %v3536_v13 = vld [vmem:[#allocation5 + $0x200] ss:$16 sps:$4 sm:$0xff]  }
  0x62   :  { %1358 = vmatprep.mubr.bf16.mxu0 %v318_v58  ;;  %1522 = vmatprep.mubr.bf16.mxu1 %v318_v58  ;;  %v3539_v14 = vld [vmem:[#allocation5 + $0x208] ss:$16 sps:$4 sm:$0xff]   ;;  %v3544_v15 = vld [vmem:[#allocation5 + $0x224] ss:$16 sps:$4 sm:$0xff]   ;;  %v3547_v16 = vld [vmem:[#allocation5 + $0x22c] ss:$16 sps:$4 sm:$0xff]  }
  0x63   :  { %v3542_v18 = vld [vmem:[#allocation5 + $0x220] ss:$16 sps:$4 sm:$0xff]   ;;  %v3545_v19 = vld [vmem:[#allocation5 + $0x228] ss:$16 sps:$4 sm:$0xff]   ;;  %v3550_v20 = vld [vmem:[#allocation5 + $0x244] ss:$16 sps:$4 sm:$0xff]  }
  0x64   :  { %1339 = vmatpush1.bf16.msra.mxu0 %v3479_v26  ;;  %1503 = vmatpush1.bf16.msra.mxu1 %v3480_v27  ;;  %v3553_v21 = vld [vmem:[#allocation5 + $0x24c] ss:$16 sps:$4 sm:$0xff]   ;;  %v3548_v22 = vld [vmem:[#allocation5 + $0x240] ss:$16 sps:$4 sm:$0xff]   ;;  %v3551_v23 = vld [vmem:[#allocation5 + $0x248] ss:$16 sps:$4 sm:$0xff]  }
  0x65   :  { %1340 = vmatprep.subr.bf16.mxu0 %v3481_v28  ;;  %1504 = vmatprep.subr.bf16.mxu1 %v3483_v29  ;;  %v3556_v24 = vld [vmem:[#allocation5 + $0x264] ss:$16 sps:$4 sm:$0xff]   ;;  %v3559_v25 = vld [vmem:[#allocation5 + $0x26c] ss:$16 sps:$4 sm:$0xff]   ;;  %v3554_v26 = vld [vmem:[#allocation5 + $0x260] ss:$16 sps:$4 sm:$0xff]  }
  0x66   :  { %v3557_v27 = vld [vmem:[#allocation5 + $0x268] ss:$16 sps:$4 sm:$0xff]   ;;  %v3562_v28 = vld [vmem:[#allocation5 + $0x284] ss:$16 sps:$4 sm:$0xff]   ;;  %v3565_v29 = vld [vmem:[#allocation5 + $0x28c] ss:$16 sps:$4 sm:$0xff]  }
  0x67   :  { %v3574_v36 = vld [vmem:[#allocation5 + $0x2c4] ss:$16 sps:$4 sm:$0xff]   ;;  %v3577_v37 = vld [vmem:[#allocation5 + $0x2cc] ss:$16 sps:$4 sm:$0xff]   ;;  %v3572_v38 = vld [vmem:[#allocation5 + $0x2c0] ss:$16 sps:$4 sm:$0xff]  }
  0x68   :  { %1341 = vmatpush1.bf16.msra.mxu0 %v3485_v30  ;;  %1505 = vmatpush1.bf16.msra.mxu1 %v3486_v31  ;;  %v3560_v30 = vld [vmem:[#allocation5 + $0x280] ss:$16 sps:$4 sm:$0xff]   ;;  %v3563_v31 = vld [vmem:[#allocation5 + $0x288] ss:$16 sps:$4 sm:$0xff]   ;;  %v3604_v58 = vld [vmem:[#allocation5 + $0x364] ss:$16 sps:$4 sm:$0xff]  }
  0x69   :  { %1342 = vmatprep.subr.bf16.mxu0 %v3487_v32  ;;  %1506 = vmatprep.subr.bf16.mxu1 %v3489_v33  ;;  %v3568_v32 = vld [vmem:[#allocation5 + $0x2a4] ss:$16 sps:$4 sm:$0xff]   ;;  %v3571_v33 = vld [vmem:[#allocation5 + $0x2ac] ss:$16 sps:$4 sm:$0xff]   ;;  %v3578_v43 = vld [vmem:[#allocation5 + $0x2e0] ss:$16 sps:$4 sm:$0xff]  }
  0x6a   :  { %v3590_v52 = vld [vmem:[#allocation5 + $0x320] ss:$16 sps:$4 sm:$0xff]   ;;  %v3625_v7 = vld [vmem:[#allocation5 + $0x3cc] ss:$16 sps:$4 sm:$0xff]   ;;  %s2974_s30 = sshll.u32 %s4087_s29, 4  ;;  %s2975_s30 = int_to_ptr.vmem [resolvable:$true] %s2974_s30 }
  0x6b   :  { %s4047_s8 = scalar_lea.vmem %s2975_s30, 64  ;;  %p4052_p5 = scmp.lt.s32.totalorder %s2975_s30, %s2975_s30 }
  0x6c   :  { %1343 = vmatpush1.bf16.msra.mxu0 %v3491_v34  ;;  %1507 = vmatpush1.bf16.msra.mxu1 %v3492_v35  ;;  %v3566_v34 = vld [vmem:[#allocation5 + $0x2a0] ss:$16 sps:$4 sm:$0xff]   ;;  %v3569_v35 = vld [vmem:[#allocation5 + $0x2a8] ss:$16 sps:$4 sm:$0xff]   ;;  %p4048_p4 = scmp.ne.s32.totalorder %s2975_s30, %s4047_s8  ;;  %p4053_p6 = scmp.lt.s32.totalorder %s4047_s8, %s4047_s8 }
  0x6d   :  { %1344 = vmatprep.subr.bf16.mxu0 %v3493_v39  ;;  %1508 = vmatprep.subr.bf16.mxu1 %v3495_v40  ;;  %v3575_v39 = vld [vmem:[#allocation5 + $0x2c8] ss:$16 sps:$4 sm:$0xff]   ;;  %v3580_v40 = vld [vmem:[#allocation5 + $0x2e4] ss:$16 sps:$4 sm:$0xff]  }
  0x6e   :  { %p4054_p7 = por %p4053_p6, %p4052_p5 }
  0x70   :  { %1345 = vmatpush1.bf16.msra.mxu0 %v3497_v41  ;;  %1509 = vmatpush1.bf16.msra.mxu1 %v3498_v44  ;;  %v3583_v41 = vld [vmem:[#allocation5 + $0x2ec] ss:$16 sps:$4 sm:$0xff]   ;;  %v3581_v44 = vld [vmem:[#allocation5 + $0x2e8] ss:$16 sps:$4 sm:$0xff]   ;;  %p4055_p8 = pnand %p4054_p7, %p4048_p4 }
  0x71   :  { %1346 = vmatprep.subr.bf16.mxu0 %v3499_v45  ;;  %1510 = vmatprep.subr.bf16.mxu1 %v3501_v46  ;;  %v3586_v45 = vld [vmem:[#allocation5 + $0x304] ss:$16 sps:$4 sm:$0xff]   ;;  %v3589_v46 = vld [vmem:[#allocation5 + $0x30c] ss:$16 sps:$4 sm:$0xff]  }
  0x74   :  { %1347 = vmatpush1.bf16.msra.mxu0 %v3503_v47  ;;  %1511 = vmatpush1.bf16.msra.mxu1 %v3504_v48  ;;  %v3584_v47 = vld [vmem:[#allocation5 + $0x300] ss:$16 sps:$4 sm:$0xff]   ;;  %v3587_v48 = vld [vmem:[#allocation5 + $0x308] ss:$16 sps:$4 sm:$0xff]  }
  0x75   :  { %1348 = vmatprep.subr.bf16.mxu0 %v3505_v50  ;;  %1512 = vmatprep.subr.bf16.mxu1 %v3507_v51  ;;  %v3592_v50 = vld [vmem:[#allocation5 + $0x324] ss:$16 sps:$4 sm:$0xff]   ;;  %v3595_v51 = vld [vmem:[#allocation5 + $0x32c] ss:$16 sps:$4 sm:$0xff]  }
  0x78   :  { %1349 = vmatpush1.bf16.msra.mxu0 %v3509_v53  ;;  %1513 = vmatpush1.bf16.msra.mxu1 %v3510_v55  ;;  %v3593_v53 = vld [vmem:[#allocation5 + $0x328] ss:$16 sps:$4 sm:$0xff]   ;;  %v3601_v55 = vld [vmem:[#allocation5 + $0x34c] ss:$16 sps:$4 sm:$0xff]  }
  0x79   :  { %1350 = vmatprep.subr.bf16.mxu0 %v3511_v56  ;;  %1514 = vmatprep.subr.bf16.mxu1 %v3513_v57  ;;  %v3596_v56 = vld [vmem:[#allocation5 + $0x340] ss:$16 sps:$4 sm:$0xff]   ;;  %v3599_v57 = vld [vmem:[#allocation5 + $0x348] ss:$16 sps:$4 sm:$0xff]  }
  0x7c   :  { %1351 = vmatpush1.bf16.msra.mxu0 %v3515_v59  ;;  %1515 = vmatpush1.bf16.msra.mxu1 %v3516_v60  ;;  %v3607_v59 = vld [vmem:[#allocation5 + $0x36c] ss:$16 sps:$4 sm:$0xff]   ;;  %v3602_v60 = vld [vmem:[#allocation5 + $0x360] ss:$16 sps:$4 sm:$0xff]  }
  0x7d   :  { %1352 = vmatprep.subr.bf16.mxu0 %v3517_v61  ;;  %1516 = vmatprep.subr.bf16.mxu1 %v3519_v62  ;;  %v3605_v61 = vld [vmem:[#allocation5 + $0x368] ss:$16 sps:$4 sm:$0xff]   ;;  %v3610_v62 = vld [vmem:[#allocation5 + $0x384] ss:$16 sps:$4 sm:$0xff]  }
  0x80   :  { %1353 = vmatpush1.bf16.msra.mxu0 %v3521_v63  ;;  %1517 = vmatpush1.bf16.msra.mxu1 %v3522_v0  ;;  %v3613_v63 = vld [vmem:[#allocation5 + $0x38c] ss:$16 sps:$4 sm:$0xff]   ;;  %v3608_v0 = vld [vmem:[#allocation5 + $0x380] ss:$16 sps:$4 sm:$0xff]  }
  0x81   :  { %1354 = vmatprep.subr.bf16.mxu0 %v3523_v1  ;;  %1518 = vmatprep.subr.bf16.mxu1 %v3525_v2  ;;  %v3611_v1 = vld [vmem:[#allocation5 + $0x388] ss:$16 sps:$4 sm:$0xff]   ;;  %v3616_v2 = vld [vmem:[#allocation5 + $0x3a4] ss:$16 sps:$4 sm:$0xff]  }
  0x84   :  { %1355 = vmatpush1.bf16.msra.mxu0 %v3527_v3  ;;  %1519 = vmatpush1.bf16.msra.mxu1 %v3528_v4  ;;  %v3619_v3 = vld [vmem:[#allocation5 + $0x3ac] ss:$16 sps:$4 sm:$0xff]   ;;  %v3614_v4 = vld [vmem:[#allocation5 + $0x3a0] ss:$16 sps:$4 sm:$0xff]  }
  0x85   :  { %1356 = vmatprep.subr.bf16.mxu0 %v3529_v5  ;;  %1520 = vmatprep.subr.bf16.mxu1 %v3531_v6  ;;  %v3617_v5 = vld [vmem:[#allocation5 + $0x3a8] ss:$16 sps:$4 sm:$0xff]   ;;  %v3622_v6 = vld [vmem:[#allocation5 + $0x3c4] ss:$16 sps:$4 sm:$0xff]  }
  0x88   :  { %1357 = vmatpush1.bf16.msra.mxu0 %v3533_v8  ;;  %1521 = vmatpush1.bf16.msra.mxu1 %v3534_v9  ;;  %v3620_v8 = vld [vmem:[#allocation5 + $0x3c0] ss:$16 sps:$4 sm:$0xff]   ;;  %v3623_v9 = vld [vmem:[#allocation5 + $0x3c8] ss:$16 sps:$4 sm:$0xff]  }
  0x89   :  { %1367 = vmatprep.subr.bf16.mxu0 %v3538_v10  ;;  %1531 = vmatprep.subr.bf16.mxu1 %v3541_v11  ;;  %v3628_v10 = vld [vmem:[#allocation5 + $0x3e4] ss:$16 sps:$4 sm:$0xff]   ;;  %v3631_v11 = vld [vmem:[#allocation5 + $0x3ec] ss:$16 sps:$4 sm:$0xff]  }
  0x8b   :  { %1359 = vmatmul.mubr.bf16.vlgmr.msra.gmra.mrb[0].mxu0 %v310_v54  ;;  %1523 = vmatmul.mubr.bf16.vlgmr.msra.gmra.mrb[0].mxu1 %v310_v54  ;;  %v3598_v54 = vld [vmem:[#allocation5 + $0x344] ss:$16 sps:$4 sm:$0xff]  }
  0x8c   :  { %1368 = vmatpush1.bf16.msra.mxu0 %v3536_v13  ;;  %1532 = vmatpush1.bf16.msra.mxu1 %v3539_v14  ;;  %v3626_v13 = vld [vmem:[#allocation5 + $0x3e0] ss:$16 sps:$4 sm:$0xff]   ;;  %v3629_v14 = vld [vmem:[#allocation5 + $0x3e8] ss:$16 sps:$4 sm:$0xff]  }
  0x8d   :  { %1369 = vmatprep.subr.bf16.mxu0 %v3544_v15  ;;  %1533 = vmatprep.subr.bf16.mxu1 %v3547_v16  ;;  %v3634_v15 = vld [vmem:[#allocation5 + $0x404] ss:$16 sps:$4 sm:$0xff]   ;;  %v3637_v16 = vld [vmem:[#allocation5 + $0x40c] ss:$16 sps:$4 sm:$0xff]  }
  0x8e   :  { %1399 = vmatprep.mubr.bf16.mxu0 %v319_v17  ;;  %1563 = vmatprep.mubr.bf16.mxu1 %v319_v17  ;;  %v3632_v17 = vld [vmem:[#allocation5 + $0x400] ss:$16 sps:$4 sm:$0xff]  }
  0x90   :  { %1370 = vmatpush1.bf16.msra.mxu0 %v3542_v18  ;;  %1534 = vmatpush1.bf16.msra.mxu1 %v3545_v19  ;;  %v3635_v18 = vld [vmem:[#allocation5 + $0x408] ss:$16 sps:$4 sm:$0xff]  }
  0x91   :  { %1371 = vmatprep.subr.bf16.mxu0 %v3550_v20  ;;  %1535 = vmatprep.subr.bf16.mxu1 %v3553_v21  ;;  %v4193_v19 = vld [vmem:[#allocation2 + $0x8] sm:$0x3f]  ;;  %v3640_v20 = vld [vmem:[#allocation5 + $0x424] ss:$16 sps:$4 sm:$0xff]  }
  0x92   :  { %v3643_v21 = vld [vmem:[#allocation5 + $0x42c] ss:$16 sps:$4 sm:$0xff]  }
  0x94   :  { %1372 = vmatpush1.bf16.msra.mxu0 %v3548_v22  ;;  %1536 = vmatpush1.bf16.msra.mxu1 %v3551_v23  ;;  %v4197_v22 = vrot.slane %v4193_v19, %v4185_v49 }
  0x95   :  { %1373 = vmatprep.subr.bf16.mxu0 %v3556_v24  ;;  %1537 = vmatprep.subr.bf16.mxu1 %v3559_v25  ;;  %v3638_v24 = vld [vmem:[#allocation5 + $0x420] ss:$16 sps:$4 sm:$0xff]   ;;  %v3641_v25 = vld [vmem:[#allocation5 + $0x428] ss:$16 sps:$4 sm:$0xff]  }
  0x96   :  { %v335_v23 = vcombine.high %v4197_v22, %v4197_v22 }
  0x98   :  { %1374 = vmatpush1.bf16.msra.mxu0 %v3554_v26  ;;  %1538 = vmatpush1.bf16.msra.mxu1 %v3557_v27  ;;  %v3646_v26 = vld [vmem:[#allocation5 + $0x444] ss:$16 sps:$4 sm:$0xff]   ;;  %v3649_v27 = vld [vmem:[#allocation5 + $0x44c] ss:$16 sps:$4 sm:$0xff]  }
  0x99   :  { %1375 = vmatprep.subr.bf16.mxu0 %v3562_v28  ;;  %1539 = vmatprep.subr.bf16.mxu1 %v3565_v29  ;;  %v3644_v28 = vld [vmem:[#allocation5 + $0x440] ss:$16 sps:$4 sm:$0xff]   ;;  %v3647_v29 = vld [vmem:[#allocation5 + $0x448] ss:$16 sps:$4 sm:$0xff]  }
  0x9c   :  { %1376 = vmatpush1.bf16.msra.mxu0 %v3560_v30  ;;  %1540 = vmatpush1.bf16.msra.mxu1 %v3563_v31  ;;  %v3655_v30 = vld [vmem:[#allocation5 + $0x46c] ss:$16 sps:$4 sm:$0xff]   ;;  %v3650_v31 = vld [vmem:[#allocation5 + $0x460] ss:$16 sps:$4 sm:$0xff]  }
  0x9d   :  { %1377 = vmatprep.subr.bf16.mxu0 %v3568_v32  ;;  %1541 = vmatprep.subr.bf16.mxu1 %v3571_v33  ;;  %v3653_v32 = vld [vmem:[#allocation5 + $0x468] ss:$16 sps:$4 sm:$0xff]   ;;  %v3658_v33 = vld [vmem:[#allocation5 + $0x484] ss:$16 sps:$4 sm:$0xff]  }
  0xa0   :  { %1378 = vmatpush1.bf16.msra.mxu0 %v3566_v34  ;;  %1542 = vmatpush1.bf16.msra.mxu1 %v3569_v35  ;;  %v3661_v34 = vld [vmem:[#allocation5 + $0x48c] ss:$16 sps:$4 sm:$0xff]   ;;  %v3656_v35 = vld [vmem:[#allocation5 + $0x480] ss:$16 sps:$4 sm:$0xff]  }
  0xa1   :  { %1379 = vmatprep.subr.bf16.mxu0 %v3574_v36  ;;  %1543 = vmatprep.subr.bf16.mxu1 %v3577_v37  ;;  %v3659_v36 = vld [vmem:[#allocation5 + $0x488] ss:$16 sps:$4 sm:$0xff]   ;;  %v3664_v37 = vld [vmem:[#allocation5 + $0x4a4] ss:$16 sps:$4 sm:$0xff]  }
  0xa4   :  { %1380 = vmatpush1.bf16.msra.mxu0 %v3572_v38  ;;  %1544 = vmatpush1.bf16.msra.mxu1 %v3575_v39  ;;  %v3667_v38 = vld [vmem:[#allocation5 + $0x4ac] ss:$16 sps:$4 sm:$0xff]   ;;  %v3662_v39 = vld [vmem:[#allocation5 + $0x4a0] ss:$16 sps:$4 sm:$0xff]  }
  0xa5   :  { %1381 = vmatprep.subr.bf16.mxu0 %v3580_v40  ;;  %1545 = vmatprep.subr.bf16.mxu1 %v3583_v41  ;;  %v3665_v40 = vld [vmem:[#allocation5 + $0x4a8] ss:$16 sps:$4 sm:$0xff]   ;;  %v3670_v41 = vld [vmem:[#allocation5 + $0x4c4] ss:$16 sps:$4 sm:$0xff]  }
  0xa8   :  { %1382 = vmatpush1.bf16.msra.mxu0 %v3578_v43  ;;  %1546 = vmatpush1.bf16.msra.mxu1 %v3581_v44  ;;  %v3673_v43 = vld [vmem:[#allocation5 + $0x4cc] ss:$16 sps:$4 sm:$0xff]   ;;  %v3668_v44 = vld [vmem:[#allocation5 + $0x4c0] ss:$16 sps:$4 sm:$0xff]  }
  0xa9   :  { %1383 = vmatprep.subr.bf16.mxu0 %v3586_v45  ;;  %1547 = vmatprep.subr.bf16.mxu1 %v3589_v46  ;;  %v3671_v45 = vld [vmem:[#allocation5 + $0x4c8] ss:$16 sps:$4 sm:$0xff]   ;;  %v3676_v46 = vld [vmem:[#allocation5 + $0x4e4] ss:$16 sps:$4 sm:$0xff]  }
  0xac   :  { %1384 = vmatpush1.bf16.msra.mxu0 %v3584_v47  ;;  %1548 = vmatpush1.bf16.msra.mxu1 %v3587_v48  ;;  %v3679_v47 = vld [vmem:[#allocation5 + $0x4ec] ss:$16 sps:$4 sm:$0xff]   ;;  %v3674_v48 = vld [vmem:[#allocation5 + $0x4e0] ss:$16 sps:$4 sm:$0xff]  }
  0xad   :  { %1385 = vmatprep.subr.bf16.mxu0 %v3592_v50  ;;  %1549 = vmatprep.subr.bf16.mxu1 %v3595_v51  ;;  %v3677_v50 = vld [vmem:[#allocation5 + $0x4e8] ss:$16 sps:$4 sm:$0xff]   ;;  %v3682_v51 = vld [vmem:[#allocation5 + $0x504] ss:$16 sps:$4 sm:$0xff]  }
  0xb0   :  { %1386 = vmatpush1.bf16.msra.mxu0 %v3590_v52  ;;  %1550 = vmatpush1.bf16.msra.mxu1 %v3593_v53  ;;  %v3685_v52 = vld [vmem:[#allocation5 + $0x50c] ss:$16 sps:$4 sm:$0xff]   ;;  %v3680_v53 = vld [vmem:[#allocation5 + $0x500] ss:$16 sps:$4 sm:$0xff]  }
  0xb1   :  { %1387 = vmatprep.subr.bf16.mxu0 %v3598_v54  ;;  %1551 = vmatprep.subr.bf16.mxu1 %v3601_v55  ;;  %v3683_v54 = vld [vmem:[#allocation5 + $0x508] ss:$16 sps:$4 sm:$0xff]   ;;  %v3688_v55 = vld [vmem:[#allocation5 + $0x524] ss:$16 sps:$4 sm:$0xff]  }
  0xb4   :  { %1388 = vmatpush1.bf16.msra.mxu0 %v3596_v56  ;;  %1552 = vmatpush1.bf16.msra.mxu1 %v3599_v57  ;;  %v3691_v56 = vld [vmem:[#allocation5 + $0x52c] ss:$16 sps:$4 sm:$0xff]   ;;  %v3686_v57 = vld [vmem:[#allocation5 + $0x520] ss:$16 sps:$4 sm:$0xff]  }
  0xb5   :  { %1389 = vmatprep.subr.bf16.mxu0 %v3604_v58  ;;  %1553 = vmatprep.subr.bf16.mxu1 %v3607_v59  ;;  %v3689_v58 = vld [vmem:[#allocation5 + $0x528] ss:$16 sps:$4 sm:$0xff]   ;;  %v3694_v59 = vld [vmem:[#allocation5 + $0x544] ss:$16 sps:$4 sm:$0xff]  }
  0xb8   :  { %1390 = vmatpush1.bf16.msra.mxu0 %v3602_v60  ;;  %1554 = vmatpush1.bf16.msra.mxu1 %v3605_v61  ;;  %v3697_v60 = vld [vmem:[#allocation5 + $0x54c] ss:$16 sps:$4 sm:$0xff]   ;;  %v3692_v61 = vld [vmem:[#allocation5 + $0x540] ss:$16 sps:$4 sm:$0xff]  }
  0xb9   :  { %1391 = vmatprep.subr.bf16.mxu0 %v3610_v62  ;;  %1555 = vmatprep.subr.bf16.mxu1 %v3613_v63  ;;  %v3695_v62 = vld [vmem:[#allocation5 + $0x548] ss:$16 sps:$4 sm:$0xff]   ;;  %v3700_v63 = vld [vmem:[#allocation5 + $0x564] ss:$16 sps:$4 sm:$0xff]  }
  0xbc   :  { %1392 = vmatpush1.bf16.msra.mxu0 %v3608_v0  ;;  %1556 = vmatpush1.bf16.msra.mxu1 %v3611_v1  ;;  %v3703_v0 = vld [vmem:[#allocation5 + $0x56c] ss:$16 sps:$4 sm:$0xff]   ;;  %v3698_v1 = vld [vmem:[#allocation5 + $0x560] ss:$16 sps:$4 sm:$0xff]  }
  0xbd   :  { %1393 = vmatprep.subr.bf16.mxu0 %v3616_v2  ;;  %1557 = vmatprep.subr.bf16.mxu1 %v3619_v3  ;;  %v3701_v2 = vld [vmem:[#allocation5 + $0x568] ss:$16 sps:$4 sm:$0xff]   ;;  %v3706_v3 = vld [vmem:[#allocation5 + $0x584] ss:$16 sps:$4 sm:$0xff]  }
  0xc0   :  { %1394 = vmatpush1.bf16.msra.mxu0 %v3614_v4  ;;  %1558 = vmatpush1.bf16.msra.mxu1 %v3617_v5  ;;  %v3709_v4 = vld [vmem:[#allocation5 + $0x58c] ss:$16 sps:$4 sm:$0xff]   ;;  %v3704_v5 = vld [vmem:[#allocation5 + $0x580] ss:$16 sps:$4 sm:$0xff]  }
  0xc1   :  { %1395 = vmatprep.subr.bf16.mxu0 %v3622_v6  ;;  %1559 = vmatprep.subr.bf16.mxu1 %v3625_v7  ;;  %v3707_v6 = vld [vmem:[#allocation5 + $0x588] ss:$16 sps:$4 sm:$0xff]   ;;  %v3712_v7 = vld [vmem:[#allocation5 + $0x5a4] ss:$16 sps:$4 sm:$0xff]  }
  0xc4   :  { %1396 = vmatpush1.bf16.msra.mxu0 %v3620_v8  ;;  %1560 = vmatpush1.bf16.msra.mxu1 %v3623_v9  ;;  %v3715_v8 = vld [vmem:[#allocation5 + $0x5ac] ss:$16 sps:$4 sm:$0xff]   ;;  %v3710_v9 = vld [vmem:[#allocation5 + $0x5a0] ss:$16 sps:$4 sm:$0xff]  }
  0xc5   :  { %1397 = vmatprep.subr.bf16.mxu0 %v3628_v10  ;;  %1561 = vmatprep.subr.bf16.mxu1 %v3631_v11  ;;  %v3713_v10 = vld [vmem:[#allocation5 + $0x5a8] ss:$16 sps:$4 sm:$0xff]   ;;  %v3718_v11 = vld [vmem:[#allocation5 + $0x5c4] ss:$16 sps:$4 sm:$0xff]  }
  0xc8   :  { %1398 = vmatpush1.bf16.msra.mxu0 %v3626_v13  ;;  %1562 = vmatpush1.bf16.msra.mxu1 %v3629_v14  ;;  %v3721_v13 = vld [vmem:[#allocation5 + $0x5cc] ss:$16 sps:$4 sm:$0xff]   ;;  %v3716_v14 = vld [vmem:[#allocation5 + $0x5c0] ss:$16 sps:$4 sm:$0xff]  }
  0xc9   :  { %1408 = vmatprep.subr.bf16.mxu0 %v3634_v15  ;;  %1572 = vmatprep.subr.bf16.mxu1 %v3637_v16  ;;  %v3719_v15 = vld [vmem:[#allocation5 + $0x5c8] ss:$16 sps:$4 sm:$0xff]   ;;  %v3724_v16 = vld [vmem:[#allocation5 + $0x5e4] ss:$16 sps:$4 sm:$0xff]  }
  0xcb   :  { %1400 = vmatmul.mubr.bf16.vlgmr.msra.gmra.mrb[0].mxu0 %v4189_v12  ;;  %1564 = vmatmul.mubr.bf16.vlgmr.msra.gmra.mrb[0].mxu1 %v4189_v12  ;;  %v3652_v12 = vld [vmem:[#allocation5 + $0x464] ss:$16 sps:$4 sm:$0xff]  }
  0xcc   :  { %1409 = vmatpush1.bf16.msra.mxu0 %v3632_v17  ;;  %1573 = vmatpush1.bf16.msra.mxu1 %v3635_v18  ;;  %v3727_v17 = vld [vmem:[#allocation5 + $0x5ec] ss:$16 sps:$4 sm:$0xff]   ;;  %v3722_v18 = vld [vmem:[#allocation5 + $0x5e0] ss:$16 sps:$4 sm:$0xff]  }
  0xcd   :  { %1410 = vmatprep.subr.bf16.mxu0 %v3640_v20  ;;  %1574 = vmatprep.subr.bf16.mxu1 %v3643_v21  ;;  %v3725_v20 = vld [vmem:[#allocation5 + $0x5e8] ss:$16 sps:$4 sm:$0xff]   ;;  %v3731_v21 = vld [vmem:[#allocation5 + $0x604] ss:$16 sps:$4 sm:$0xff]  }
  0xce   :  { %1440 = vmatprep.mubr.bf16.mxu0 %v335_v23  ;;  %1604 = vmatprep.mubr.bf16.mxu1 %v335_v23  ;;  %v3734_v23 = vld [vmem:[#allocation5 + $0x60c] ss:$16 sps:$4 sm:$0xff]  }
  0xd0   :  { %1411 = vmatpush1.bf16.msra.mxu0 %v3638_v24  ;;  %1575 = vmatpush1.bf16.msra.mxu1 %v3641_v25  ;;  %v3729_v24 = vld [vmem:[#allocation5 + $0x600] ss:$16 sps:$4 sm:$0xff]   ;;  %v3732_v25 = vld [vmem:[#allocation5 + $0x608] ss:$16 sps:$4 sm:$0xff]  }
  0xd1   :  { %1412 = vmatprep.subr.bf16.mxu0 %v3646_v26  ;;  %1576 = vmatprep.subr.bf16.mxu1 %v3649_v27  ;;  %v3737_v26 = vld [vmem:[#allocation7 + $0x4] ss:$16 sps:$4 sm:$0xff]   ;;  %v3740_v27 = vld [vmem:[#allocation7 + $0xc] ss:$16 sps:$4 sm:$0xff]  }
  0xd4   :  { %1413 = vmatpush1.bf16.msra.mxu0 %v3644_v28  ;;  %1577 = vmatpush1.bf16.msra.mxu1 %v3647_v29  ;;  %v4086_v28 = vmov 0   ;;  %v320_v29 = vcombine.high %v4193_v19, %v4193_v19  ;;  %v3758_v19 = vld [vmem:[#allocation7 + $0x6c] ss:$16 sps:$4 sm:$0xff]  }
  0xd5   :  { %1414 = vmatprep.subr.bf16.mxu0 %v3652_v12  ;;  %1578 = vmatprep.subr.bf16.mxu1 %v3655_v30  ;;  %v3735_v12 = vld [vmem:[#allocation7] ss:$16 sps:$4 sm:$0xff]   ;;  %v3738_v30 = vld [vmem:[#allocation7 + $0x8] ss:$16 sps:$4 sm:$0xff]  }
  0xd8   :  { %1415 = vmatpush1.bf16.msra.mxu0 %v3650_v31  ;;  %1579 = vmatpush1.bf16.msra.mxu1 %v3653_v32  ;;  %v334_v31 = vrot.slane %v320_v29, %v4185_v49  ;;  %v3743_v32 = vld [vmem:[#allocation7 + $0x24] ss:$16 sps:$4 sm:$0xff]   ;;  %v3753_v49 = vld [vmem:[#allocation7 + $0x60] ss:$16 sps:$4 sm:$0xff]   ;;  %v3828_v29 = vld [vmem:[#allocation7 + $0x1e8] ss:$16 sps:$4 sm:$0xff]  }
  0xd9   :  { %1416 = vmatprep.subr.bf16.mxu0 %v3658_v33  ;;  %1580 = vmatprep.subr.bf16.mxu1 %v3661_v34  ;;  %v3746_v33 = vld [vmem:[#allocation7 + $0x2c] ss:$16 sps:$4 sm:$0xff]   ;;  %v3741_v34 = vld [vmem:[#allocation7 + $0x20] ss:$16 sps:$4 sm:$0xff]  }
  0xdc   :  { %1417 = vmatpush1.bf16.msra.mxu0 %v3656_v35  ;;  %1581 = vmatpush1.bf16.msra.mxu1 %v3659_v36  ;;  %v3744_v35 = vld [vmem:[#allocation7 + $0x28] ss:$16 sps:$4 sm:$0xff]   ;;  %v3752_v36 = vld [vmem:[#allocation7 + $0x4c] ss:$16 sps:$4 sm:$0xff]  }
  0xdd   :  { %1418 = vmatprep.subr.bf16.mxu0 %v3664_v37  ;;  %1582 = vmatprep.subr.bf16.mxu1 %v3667_v38  ;;  %v3747_v37 = vld [vmem:[#allocation7 + $0x40] ss:$16 sps:$4 sm:$0xff]   ;;  %v3750_v38 = vld [vmem:[#allocation7 + $0x48] ss:$16 sps:$4 sm:$0xff]  }
  0xe0   :  { %1419 = vmatpush1.bf16.msra.mxu0 %v3662_v39  ;;  %1583 = vmatpush1.bf16.msra.mxu1 %v3665_v40  ;;  %v3755_v39 = vld [vmem:[#allocation7 + $0x64] ss:$16 sps:$4 sm:$0xff]   ;;  %v3756_v40 = vld [vmem:[#allocation7 + $0x68] ss:$16 sps:$4 sm:$0xff]  }
  0xe1   :  { %1420 = vmatprep.subr.bf16.mxu0 %v3670_v41  ;;  %1584 = vmatprep.subr.bf16.mxu1 %v3673_v43  ;;  %v3761_v41 = vld [vmem:[#allocation7 + $0x84] ss:$16 sps:$4 sm:$0xff]   ;;  %v3764_v43 = vld [vmem:[#allocation7 + $0x8c] ss:$16 sps:$4 sm:$0xff]  }
  0xe4   :  { %1421 = vmatpush1.bf16.msra.mxu0 %v3668_v44  ;;  %1585 = vmatpush1.bf16.msra.mxu1 %v3671_v45  ;;  %v3759_v44 = vld [vmem:[#allocation7 + $0x80] ss:$16 sps:$4 sm:$0xff]   ;;  %v3762_v45 = vld [vmem:[#allocation7 + $0x88] ss:$16 sps:$4 sm:$0xff]  }
  0xe5   :  { %1422 = vmatprep.subr.bf16.mxu0 %v3676_v46  ;;  %1586 = vmatprep.subr.bf16.mxu1 %v3679_v47  ;;  %v3767_v46 = vld [vmem:[#allocation7 + $0xa4] ss:$16 sps:$4 sm:$0xff]   ;;  %v3770_v47 = vld [vmem:[#allocation7 + $0xac] ss:$16 sps:$4 sm:$0xff]  }
  0xe8   :  { %1423 = vmatpush1.bf16.msra.mxu0 %v3674_v48  ;;  %1587 = vmatpush1.bf16.msra.mxu1 %v3677_v50  ;;  %v3765_v48 = vld [vmem:[#allocation7 + $0xa0] ss:$16 sps:$4 sm:$0xff]   ;;  %v3768_v50 = vld [vmem:[#allocation7 + $0xa8] ss:$16 sps:$4 sm:$0xff]  }
  0xe9   :  { %1424 = vmatprep.subr.bf16.mxu0 %v3682_v51  ;;  %1588 = vmatprep.subr.bf16.mxu1 %v3685_v52  ;;  %v3773_v51 = vld [vmem:[#allocation7 + $0xc4] ss:$16 sps:$4 sm:$0xff]   ;;  %v3776_v52 = vld [vmem:[#allocation7 + $0xcc] ss:$16 sps:$4 sm:$0xff]  }
  0xec   :  { %1425 = vmatpush1.bf16.msra.mxu0 %v3680_v53  ;;  %1589 = vmatpush1.bf16.msra.mxu1 %v3683_v54  ;;  %v3771_v53 = vld [vmem:[#allocation7 + $0xc0] ss:$16 sps:$4 sm:$0xff]   ;;  %v3774_v54 = vld [vmem:[#allocation7 + $0xc8] ss:$16 sps:$4 sm:$0xff]  }
  0xed   :  { %1426 = vmatprep.subr.bf16.mxu0 %v3688_v55  ;;  %1590 = vmatprep.subr.bf16.mxu1 %v3691_v56  ;;  %v3779_v55 = vld [vmem:[#allocation7 + $0xe4] ss:$16 sps:$4 sm:$0xff]   ;;  %v3782_v56 = vld [vmem:[#allocation7 + $0xec] ss:$16 sps:$4 sm:$0xff]  }
  0xf0   :  { %1427 = vmatpush1.bf16.msra.mxu0 %v3686_v57  ;;  %1591 = vmatpush1.bf16.msra.mxu1 %v3689_v58  ;;  %v3777_v57 = vld [vmem:[#allocation7 + $0xe0] ss:$16 sps:$4 sm:$0xff]   ;;  %v3780_v58 = vld [vmem:[#allocation7 + $0xe8] ss:$16 sps:$4 sm:$0xff]  }
  0xf1   :  { %1428 = vmatprep.subr.bf16.mxu0 %v3694_v59  ;;  %1592 = vmatprep.subr.bf16.mxu1 %v3697_v60  ;;  %v3785_v59 = vld [vmem:[#allocation7 + $0x104] ss:$16 sps:$4 sm:$0xff]   ;;  %v3788_v60 = vld [vmem:[#allocation7 + $0x10c] ss:$16 sps:$4 sm:$0xff]  }
  0xf4   :  { %1429 = vmatpush1.bf16.msra.mxu0 %v3692_v61  ;;  %1593 = vmatpush1.bf16.msra.mxu1 %v3695_v62  ;;  %v3783_v61 = vld [vmem:[#allocation7 + $0x100] ss:$16 sps:$4 sm:$0xff]   ;;  %v3786_v62 = vld [vmem:[#allocation7 + $0x108] ss:$16 sps:$4 sm:$0xff]  }
  0xf5   :  { %1430 = vmatprep.subr.bf16.mxu0 %v3700_v63  ;;  %1594 = vmatprep.subr.bf16.mxu1 %v3703_v0  ;;  %v3791_v63 = vld [vmem:[#allocation7 + $0x124] ss:$16 sps:$4 sm:$0xff]   ;;  %v3794_v0 = vld [vmem:[#allocation7 + $0x12c] ss:$16 sps:$4 sm:$0xff]  }
  0xf8   :  { %1431 = vmatpush1.bf16.msra.mxu0 %v3698_v1  ;;  %1595 = vmatpush1.bf16.msra.mxu1 %v3701_v2  ;;  %v3789_v1 = vld [vmem:[#allocation7 + $0x120] ss:$16 sps:$4 sm:$0xff]   ;;  %v3792_v2 = vld [vmem:[#allocation7 + $0x128] ss:$16 sps:$4 sm:$0xff]  }
  0xf9   :  { %1432 = vmatprep.subr.bf16.mxu0 %v3706_v3  ;;  %1596 = vmatprep.subr.bf16.mxu1 %v3709_v4  ;;  %v3797_v3 = vld [vmem:[#allocation7 + $0x144] ss:$16 sps:$4 sm:$0xff]   ;;  %v3800_v4 = vld [vmem:[#allocation7 + $0x14c] ss:$16 sps:$4 sm:$0xff]  }
  0xfc   :  { %1433 = vmatpush1.bf16.msra.mxu0 %v3704_v5  ;;  %1597 = vmatpush1.bf16.msra.mxu1 %v3707_v6  ;;  %v3795_v5 = vld [vmem:[#allocation7 + $0x140] ss:$16 sps:$4 sm:$0xff]   ;;  %v3798_v6 = vld [vmem:[#allocation7 + $0x148] ss:$16 sps:$4 sm:$0xff]  }
  0xfd   :  { %1434 = vmatprep.subr.bf16.mxu0 %v3712_v7  ;;  %1598 = vmatprep.subr.bf16.mxu1 %v3715_v8  ;;  %v3803_v7 = vld [vmem:[#allocation7 + $0x164] ss:$16 sps:$4 sm:$0xff]   ;;  %v3806_v8 = vld [vmem:[#allocation7 + $0x16c] ss:$16 sps:$4 sm:$0xff]  }
 0x100   :  { %1435 = vmatpush1.bf16.msra.mxu0 %v3710_v9  ;;  %1599 = vmatpush1.bf16.msra.mxu1 %v3713_v10  ;;  %v3801_v9 = vld [vmem:[#allocation7 + $0x160] ss:$16 sps:$4 sm:$0xff]   ;;  %v3804_v10 = vld [vmem:[#allocation7 + $0x168] ss:$16 sps:$4 sm:$0xff]  }
 0x101   :  { %1436 = vmatprep.subr.bf16.mxu0 %v3718_v11  ;;  %1600 = vmatprep.subr.bf16.mxu1 %v3721_v13  ;;  %v3809_v11 = vld [vmem:[#allocation7 + $0x184] ss:$16 sps:$4 sm:$0xff]   ;;  %v3812_v13 = vld [vmem:[#allocation7 + $0x18c] ss:$16 sps:$4 sm:$0xff]  }
 0x104   :  { %1437 = vmatpush1.bf16.msra.mxu0 %v3716_v14  ;;  %1601 = vmatpush1.bf16.msra.mxu1 %v3719_v15  ;;  %v3807_v14 = vld [vmem:[#allocation7 + $0x180] ss:$16 sps:$4 sm:$0xff]   ;;  %v3810_v15 = vld [vmem:[#allocation7 + $0x188] ss:$16 sps:$4 sm:$0xff]  }
 0x105   :  { %1438 = vmatprep.subr.bf16.mxu0 %v3724_v16  ;;  %1602 = vmatprep.subr.bf16.mxu1 %v3727_v17  ;;  %v3815_v16 = vld [vmem:[#allocation7 + $0x1a4] ss:$16 sps:$4 sm:$0xff]   ;;  %v3818_v17 = vld [vmem:[#allocation7 + $0x1ac] ss:$16 sps:$4 sm:$0xff]  }
 0x108   :  { %1439 = vmatpush1.bf16.msra.mxu0 %v3722_v18  ;;  %1603 = vmatpush1.bf16.msra.mxu1 %v3725_v20  ;;  %v3813_v18 = vld [vmem:[#allocation7 + $0x1a0] ss:$16 sps:$4 sm:$0xff]   ;;  %v3816_v20 = vld [vmem:[#allocation7 + $0x1a8] ss:$16 sps:$4 sm:$0xff]  }
 0x109   :  { %1449 = vmatprep.subr.bf16.mxu0 %v3731_v21  ;;  %1613 = vmatprep.subr.bf16.mxu1 %v3734_v23  ;;  %v3821_v21 = vld [vmem:[#allocation7 + $0x1c4] ss:$16 sps:$4 sm:$0xff]   ;;  %v3824_v23 = vld [vmem:[#allocation7 + $0x1cc] ss:$16 sps:$4 sm:$0xff]  }
 0x10b   :  { %1441 = vmatmul.mubr.bf16.vlgmr.msra.gmra.mrb[0].mxu0 %v4197_v22  ;;  %1605 = vmatmul.mubr.bf16.vlgmr.msra.gmra.mrb[0].mxu1 %v4197_v22  ;;  %v3749_v22 = vld [vmem:[#allocation7 + $0x44] ss:$16 sps:$4 sm:$0xff]  }
 0x10c   :  { %1450 = vmatpush1.bf16.msra.mxu0 %v3729_v24  ;;  %1614 = vmatpush1.bf16.msra.mxu1 %v3732_v25  ;;  %v3819_v24 = vld [vmem:[#allocation7 + $0x1c0] ss:$16 sps:$4 sm:$0xff]   ;;  %v3822_v25 = vld [vmem:[#allocation7 + $0x1c8] ss:$16 sps:$4 sm:$0xff]  }
 0x10d   :  { %1481 = vmatprep.mubr.bf16.mxu0 %v4086_v28  ;;  %1645 = vmatprep.mubr.bf16.mxu1 %v4086_v28  ;;  %v3825_v28 = vld [vmem:[#allocation7 + $0x1e0] ss:$16 sps:$4 sm:$0xff]  }
 0x10e   :  { %2452 = vmatprep.subr.bf16.mxu0 %v3737_v26  ;;  %2534 = vmatprep.subr.bf16.mxu1 %v3740_v27  ;;  %v3827_v26 = vld [vmem:[#allocation7 + $0x1e4] ss:$16 sps:$4 sm:$0xff]   ;;  %v3830_v27 = vld [vmem:[#allocation7 + $0x1ec] ss:$16 sps:$4 sm:$0xff]  }
 0x117   :  { %3181 = vmatmul.mubr.msk.bf16.vlgmr.msra.gmra.mrb[0].mxu0 %vm1322_vm0, %v334_v31  ;;  %3182 = vmatmul.mubr.msk.bf16.vlgmr.msra.gmra.mrb[0].mxu1 %vm1322_vm0, %v334_v31  ;;  %v283_v31 = vsub.s32 0, %v4182_v42 }
 0x118   :  { %2453 = vmatpush1.bf16.msra.mxu0 %v3735_v12  ;;  %2535 = vmatpush1.bf16.msra.mxu1 %v3738_v30  ;;  %v3833_v12 = vld [vmem:[#allocation7 + $0x204] ss:$16 sps:$4 sm:$0xff]   ;;  %v3836_v30 = vld [vmem:[#allocation7 + $0x20c] ss:$16 sps:$4 sm:$0xff]  }
 0x119   :  { %2454 = vmatprep.subr.bf16.mxu0 %v3743_v32  ;;  %2536 = vmatprep.subr.bf16.mxu1 %v3746_v33  ;;  %v4212_v32 = vld [vmem:[%s4260_s2] sm:$0xf]  ;;  %v287_v33 = vsub.s32 1, %v4182_v42 }
 0x11c   :  { %2455 = vmatpush1.bf16.msra.mxu0 %v3741_v34  ;;  %2537 = vmatpush1.bf16.msra.mxu1 %v3744_v35  ;;  %v295_v34 = vsub.s32 3, %v4182_v42  ;;  %v284_v35 = vrot.slane %v4212_v32, %v283_v31 }
 0x11d   :  { %2456 = vmatprep.subr.bf16.mxu0 %v3749_v22  ;;  %2538 = vmatprep.subr.bf16.mxu1 %v3752_v36  ;;  %v288_v22 = vrot.slane %v4212_v32, %v287_v33 }
 0x11e   :  { %v296_v36 = vrot.slane %v4212_v32, %v295_v34 }
 0x120   :  { %2457 = vmatpush1.bf16.msra.mxu0 %v3747_v37  ;;  %2539 = vmatpush1.bf16.msra.mxu1 %v3750_v38 }
 0x121   :  { %2458 = vmatprep.subr.bf16.mxu0 %v3755_v39  ;;  %2540 = vmatprep.subr.bf16.mxu1 %v3758_v19 }
 0x124   :  { %2459 = vmatpush1.bf16.msra.mxu0 %v3753_v49  ;;  %2541 = vmatpush1.bf16.msra.mxu1 %v3756_v40 }
 0x125   :  { %2460 = vmatprep.subr.bf16.mxu0 %v3761_v41  ;;  %2542 = vmatprep.subr.bf16.mxu1 %v3764_v43 }
 0x128   :  { %2461 = vmatpush1.bf16.msra.mxu0 %v3759_v44  ;;  %2543 = vmatpush1.bf16.msra.mxu1 %v3762_v45 }
 0x129   :  { %2462 = vmatprep.subr.bf16.mxu0 %v3767_v46  ;;  %2544 = vmatprep.subr.bf16.mxu1 %v3770_v47 }
 0x12c   :  { %2463 = vmatpush1.bf16.msra.mxu0 %v3765_v48  ;;  %2545 = vmatpush1.bf16.msra.mxu1 %v3768_v50 }
 0x12d   :  { %2464 = vmatprep.subr.bf16.mxu0 %v3773_v51  ;;  %2546 = vmatprep.subr.bf16.mxu1 %v3776_v52  ;;  %v3831_v52 = vld [vmem:[#allocation7 + $0x200] ss:$16 sps:$4 sm:$0xff]  }
 0x130   :  { %2465 = vmatpush1.bf16.msra.mxu0 %v3771_v53  ;;  %2547 = vmatpush1.bf16.msra.mxu1 %v3774_v54  ;;  %v3834_v53 = vld [vmem:[#allocation7 + $0x208] ss:$16 sps:$4 sm:$0xff]  }
 0x131   :  { %2466 = vmatprep.subr.bf16.mxu0 %v3779_v55  ;;  %2548 = vmatprep.subr.bf16.mxu1 %v3782_v56  ;;  %v3839_v55 = vld [vmem:[#allocation7 + $0x224] ss:$16 sps:$4 sm:$0xff]   ;;  %v3842_v56 = vld [vmem:[#allocation7 + $0x22c] ss:$16 sps:$4 sm:$0xff]  }
 0x134   :  { %2467 = vmatpush1.bf16.msra.mxu0 %v3777_v57  ;;  %2549 = vmatpush1.bf16.msra.mxu1 %v3780_v58  ;;  %v3837_v58 = vld [vmem:[#allocation7 + $0x220] ss:$16 sps:$4 sm:$0xff]  }
 0x135   :  { %2468 = vmatprep.subr.bf16.mxu0 %v3785_v59  ;;  %2550 = vmatprep.subr.bf16.mxu1 %v3788_v60  ;;  %v3840_v59 = vld [vmem:[#allocation7 + $0x228] ss:$16 sps:$4 sm:$0xff]   ;;  %v3845_v60 = vld [vmem:[#allocation7 + $0x244] ss:$16 sps:$4 sm:$0xff]  }
 0x138   :  { %2469 = vmatpush1.bf16.msra.mxu0 %v3783_v61  ;;  %2551 = vmatpush1.bf16.msra.mxu1 %v3786_v62  ;;  %v3848_v61 = vld [vmem:[#allocation7 + $0x24c] ss:$16 sps:$4 sm:$0xff]   ;;  %v3843_v62 = vld [vmem:[#allocation7 + $0x240] ss:$16 sps:$4 sm:$0xff]  }
 0x139   :  { %2470 = vmatprep.subr.bf16.mxu0 %v3791_v63  ;;  %2552 = vmatprep.subr.bf16.mxu1 %v3794_v0  ;;  %v3846_v63 = vld [vmem:[#allocation7 + $0x248] ss:$16 sps:$4 sm:$0xff]   ;;  %v3851_v0 = vld [vmem:[#allocation7 + $0x264] ss:$16 sps:$4 sm:$0xff]  }
 0x13c   :  { %2471 = vmatpush1.bf16.msra.mxu0 %v3789_v1  ;;  %2553 = vmatpush1.bf16.msra.mxu1 %v3792_v2  ;;  %v3854_v1 = vld [vmem:[#allocation7 + $0x26c] ss:$16 sps:$4 sm:$0xff]   ;;  %v3849_v2 = vld [vmem:[#allocation7 + $0x260] ss:$16 sps:$4 sm:$0xff]  }
 0x13d   :  { %2472 = vmatprep.subr.bf16.mxu0 %v3797_v3  ;;  %2554 = vmatprep.subr.bf16.mxu1 %v3800_v4  ;;  %v3852_v3 = vld [vmem:[#allocation7 + $0x268] ss:$16 sps:$4 sm:$0xff]   ;;  %v3857_v4 = vld [vmem:[#allocation7 + $0x284] ss:$16 sps:$4 sm:$0xff]  }
 0x140   :  { %2473 = vmatpush1.bf16.msra.mxu0 %v3795_v5  ;;  %2555 = vmatpush1.bf16.msra.mxu1 %v3798_v6  ;;  %v3860_v5 = vld [vmem:[#allocation7 + $0x28c] ss:$16 sps:$4 sm:$0xff]   ;;  %v3855_v6 = vld [vmem:[#allocation7 + $0x280] ss:$16 sps:$4 sm:$0xff]  }
 0x141   :  { %2474 = vmatprep.subr.bf16.mxu0 %v3803_v7  ;;  %2556 = vmatprep.subr.bf16.mxu1 %v3806_v8  ;;  %v3858_v7 = vld [vmem:[#allocation7 + $0x288] ss:$16 sps:$4 sm:$0xff]   ;;  %v3863_v8 = vld [vmem:[#allocation7 + $0x2a4] ss:$16 sps:$4 sm:$0xff]  }
 0x144   :  { %2475 = vmatpush1.bf16.msra.mxu0 %v3801_v9  ;;  %2557 = vmatpush1.bf16.msra.mxu1 %v3804_v10  ;;  %v3866_v9 = vld [vmem:[#allocation7 + $0x2ac] ss:$16 sps:$4 sm:$0xff]   ;;  %v3861_v10 = vld [vmem:[#allocation7 + $0x2a0] ss:$16 sps:$4 sm:$0xff]  }
 0x145   :  { %2476 = vmatprep.subr.bf16.mxu0 %v3809_v11  ;;  %2558 = vmatprep.subr.bf16.mxu1 %v3812_v13  ;;  %v3864_v11 = vld [vmem:[#allocation7 + $0x2a8] ss:$16 sps:$4 sm:$0xff]   ;;  %v3869_v13 = vld [vmem:[#allocation7 + $0x2c4] ss:$16 sps:$4 sm:$0xff]  }
 0x148   :  { %2477 = vmatpush1.bf16.msra.mxu0 %v3807_v14  ;;  %2559 = vmatpush1.bf16.msra.mxu1 %v3810_v15  ;;  %v3872_v14 = vld [vmem:[#allocation7 + $0x2cc] ss:$16 sps:$4 sm:$0xff]   ;;  %v3867_v15 = vld [vmem:[#allocation7 + $0x2c0] ss:$16 sps:$4 sm:$0xff]  }
 0x149   :  { %2478 = vmatprep.subr.bf16.mxu0 %v3815_v16  ;;  %2560 = vmatprep.subr.bf16.mxu1 %v3818_v17  ;;  %v3870_v16 = vld [vmem:[#allocation7 + $0x2c8] ss:$16 sps:$4 sm:$0xff]   ;;  %v3875_v17 = vld [vmem:[#allocation7 + $0x2e4] ss:$16 sps:$4 sm:$0xff]  }
 0x14c   :  { %2479 = vmatpush1.bf16.msra.mxu0 %v3813_v18  ;;  %2561 = vmatpush1.bf16.msra.mxu1 %v3816_v20  ;;  %v3878_v18 = vld [vmem:[#allocation7 + $0x2ec] ss:$16 sps:$4 sm:$0xff]   ;;  %v3873_v20 = vld [vmem:[#allocation7 + $0x2e0] ss:$16 sps:$4 sm:$0xff]  }
 0x14d   :  { %2480 = vmatprep.subr.bf16.mxu0 %v3821_v21  ;;  %2562 = vmatprep.subr.bf16.mxu1 %v3824_v23  ;;  %v3876_v21 = vld [vmem:[#allocation7 + $0x2e8] ss:$16 sps:$4 sm:$0xff]   ;;  %v3881_v23 = vld [vmem:[#allocation7 + $0x304] ss:$16 sps:$4 sm:$0xff]  }
 0x150   :  { %2481 = vmatpush1.bf16.msra.mxu0 %v3819_v24  ;;  %2563 = vmatpush1.bf16.msra.mxu1 %v3822_v25  ;;  %v3884_v24 = vld [vmem:[#allocation7 + $0x30c] ss:$16 sps:$4 sm:$0xff]   ;;  %v3879_v25 = vld [vmem:[#allocation7 + $0x300] ss:$16 sps:$4 sm:$0xff]  }
 0x151   :  { %2482 = vmatprep.subr.bf16.mxu0 %v3827_v26  ;;  %2564 = vmatprep.subr.bf16.mxu1 %v3830_v27  ;;  %v3882_v26 = vld [vmem:[#allocation7 + $0x308] ss:$16 sps:$4 sm:$0xff]   ;;  %v3887_v27 = vld [vmem:[#allocation7 + $0x324] ss:$16 sps:$4 sm:$0xff]  }
 0x154   :  { %2483 = vmatpush1.bf16.msra.mxu0 %v3825_v28  ;;  %2565 = vmatpush1.bf16.msra.mxu1 %v3828_v29  ;;  %v3890_v28 = vld [vmem:[#allocation7 + $0x32c] ss:$16 sps:$4 sm:$0xff]   ;;  %v3885_v29 = vld [vmem:[#allocation7 + $0x320] ss:$16 sps:$4 sm:$0xff]  }
 0x155   :  { %2493 = vmatprep.subr.bf16.mxu0 %v3833_v12  ;;  %2575 = vmatprep.subr.bf16.mxu1 %v3836_v30  ;;  %v3888_v12 = vld [vmem:[#allocation7 + $0x328] ss:$16 sps:$4 sm:$0xff]   ;;  %v3893_v30 = vld [vmem:[#allocation7 + $0x344] ss:$16 sps:$4 sm:$0xff]  }
 0x1ea   :  { %v1483_v37 = vpop.f32.mrb[0].mxu0  ;;  %v4225_v38 = vpop.f32.mrb[0].mxu1 }
 0x1eb   :  { %v3388_v39 = vadd.f32 %v1483_v37, %v284_v35  ;;  %v1485_v19 = vpop.f32.mrb[1].mxu0  ;;  %v1649_v49 = vpop.f32.mrb[1].mxu1  ;;  %v3896_v35 = vld [vmem:[#allocation7 + $0x34c] ss:$16 sps:$4 sm:$0xff]   ;;  %v3899_v37 = vld [vmem:[#allocation7 + $0x364] ss:$16 sps:$4 sm:$0xff]  }
 0x1ec   :  { %v3389_v40 = vadd.f32 %v1485_v19, %v288_v22  ;;  %v3391_v41 = vadd.f32 %v1649_v49, %v296_v36  ;;  %v1487_v43 = vpop.f32.mrb[2].mxu0  ;;  %v1651_v44 = vpop.f32.mrb[2].mxu1  ;;  %v3891_v22 = vld [vmem:[#allocation7 + $0x340] ss:$16 sps:$4 sm:$0xff]   ;;  %v3894_v36 = vld [vmem:[#allocation7 + $0x348] ss:$16 sps:$4 sm:$0xff]  }
 0x1ed   :  { %v1654_v45 = vmax.f32 %v3388_v39, 0.0  ;;  %v1488_v46 = vpop.f32.mrb[3].mxu0  ;;  %v1652_v47 = vpop.f32.mrb[3].mxu1  ;;  %v3902_v39 = vld [vmem:[#allocation7 + $0x36c] ss:$16 sps:$4 sm:$0xff]  }
 0x1ee   :  { %v1655_v48 = vmax.f32 %v3389_v40, 0.0  ;;  %v1657_v50 = vmax.f32 %v3391_v41, 0.0  ;;  %v3897_v19 = vld [vmem:[#allocation7 + $0x360] ss:$16 sps:$4 sm:$0xff]   ;;  %v3900_v49 = vld [vmem:[#allocation7 + $0x368] ss:$16 sps:$4 sm:$0xff]  }
 0x1ef   :  { %v1658_v54 = vpack.c.bf16 %v1654_v45, %v1654_v45  ;;  %v3905_v40 = vld [vmem:[#allocation7 + $0x384] ss:$16 sps:$4 sm:$0xff]   ;;  %v3908_v41 = vld [vmem:[#allocation7 + $0x38c] ss:$16 sps:$4 sm:$0xff]   ;;  %v3903_v43 = vld [vmem:[#allocation7 + $0x380] ss:$16 sps:$4 sm:$0xff]  }
 0x1f0   :  { %v1659_v51 = vpack.c.bf16 %v1655_v48, %v1655_v48  ;;  %v1661_v57 = vpack.c.bf16 %v1657_v50, %v1657_v50  ;;  %v3906_v44 = vld [vmem:[#allocation7 + $0x388] ss:$16 sps:$4 sm:$0xff]   ;;  %v291_v45 = vsub.s32 2, %v4182_v42  ;;  %v3911_v46 = vld [vmem:[#allocation7 + $0x3a4] ss:$16 sps:$4 sm:$0xff]  }
 0x1f1   :  { %v3914_v47 = vld [vmem:[#allocation7 + $0x3ac] ss:$16 sps:$4 sm:$0xff]   ;;  %v3909_v48 = vld [vmem:[#allocation7 + $0x3a0] ss:$16 sps:$4 sm:$0xff]   ;;  %v3912_v50 = vld [vmem:[#allocation7 + $0x3a8] ss:$16 sps:$4 sm:$0xff]  }
 0x1f2   :  { %2484 = vmatprep.mubr.bf16.mxu0 %v1659_v51  ;;  %2566 = vmatprep.mubr.bf16.mxu1 %v1659_v51  ;;  %v292_v51 = vrot.slane %v4212_v32, %v291_v45  ;;  %v3927_v32 = vld [vmem:[#allocation8 + $0x40] sm:$0xff]  }
 0x1f3   :  { %2485 = vmatmul.mubr.bf16.vlgmr.msra.gmra.mrb[4].mxu0 %v1658_v54  ;;  %2567 = vmatmul.mubr.bf16.vlgmr.msra.gmra.mrb[4].mxu1 %v1658_v54  ;;  %v3915_v54 = vld [vmem:[#allocation7 + $0x3c0] ss:$16 sps:$4 sm:$0xff]  }
 0x1f4   :  { %2494 = vmatpush1.bf16.msra.mxu0 %v3831_v52  ;;  %2576 = vmatpush1.bf16.msra.mxu1 %v3834_v53  ;;  %v3917_v52 = vld [vmem:[#allocation7 + $0x3c4] ss:$16 sps:$4 sm:$0xff]   ;;  %v3920_v53 = vld [vmem:[#allocation7 + $0x3cc] ss:$16 sps:$4 sm:$0xff]  }
 0x1f5   :  { %2525 = vmatprep.mubr.bf16.mxu0 %v1661_v57  ;;  %2607 = vmatprep.mubr.bf16.mxu1 %v1661_v57  ;;  %v3923_v57 = vld [vmem:[#allocation7 + $0x3e4] ss:$16 sps:$4 sm:$0xff]  }
 0x1f6   :  { %2495 = vmatprep.subr.bf16.mxu0 %v3839_v55  ;;  %2577 = vmatprep.subr.bf16.mxu1 %v3842_v56  ;;  %v3918_v55 = vld [vmem:[#allocation7 + $0x3c8] ss:$16 sps:$4 sm:$0xff]   ;;  %v3390_v56 = vadd.f32 %v4225_v38, %v292_v51 }
 0x1f7   :  { %v3931_v38 = vld [vmem:[#allocation8 + $0x48] sm:$0xff]  }
 0x1f8   :  { %2496 = vmatpush1.bf16.msra.mxu0 %v3837_v58  ;;  %2578 = vmatpush1.bf16.msra.mxu1 %v3840_v59  ;;  %v3926_v58 = vld [vmem:[#allocation7 + $0x3ec] ss:$16 sps:$4 sm:$0xff]   ;;  %v3921_v59 = vld [vmem:[#allocation7 + $0x3e0] ss:$16 sps:$4 sm:$0xff]  }
 0x1f9   :  { %2497 = vmatprep.subr.bf16.mxu0 %v3845_v60  ;;  %2579 = vmatprep.subr.bf16.mxu1 %v3848_v61  ;;  %v3924_v60 = vld [vmem:[#allocation7 + $0x3e8] ss:$16 sps:$4 sm:$0xff]   ;;  %v1656_v61 = vmax.f32 %v3390_v56, 0.0 }
 0x1fc   :  { %2498 = vmatpush1.bf16.msra.mxu0 %v3843_v62  ;;  %2580 = vmatpush1.bf16.msra.mxu1 %v3846_v63  ;;  %v3928_v62 = vld [vmem:[#allocation8 + $0xc0] sm:$0xff]  }
 0x1fd   :  { %2499 = vmatprep.subr.bf16.mxu0 %v3851_v0  ;;  %2581 = vmatprep.subr.bf16.mxu1 %v3854_v1  ;;  %v3929_v63 = vld [vmem:[#allocation8] sm:$0xff]   ;;  %v1660_v1 = vpack.c.bf16 %v1656_v61, %v1656_v61 }
 0x1fe   :  { %v3930_v0 = vld [vmem:[#allocation8 + $0x80] sm:$0xff]  }
 0x200   :  { %2500 = vmatpush1.bf16.msra.mxu0 %v3849_v2  ;;  %2582 = vmatpush1.bf16.msra.mxu1 %v3852_v3  ;;  %v3932_v2 = vld [vmem:[#allocation8 + $0xc8] sm:$0xff]  }
 0x201   :  { %2501 = vmatprep.subr.bf16.mxu0 %v3857_v4  ;;  %2583 = vmatprep.subr.bf16.mxu1 %v3860_v5  ;;  %v3933_v3 = vld [vmem:[#allocation8 + $0x8] sm:$0xff]   ;;  %v3935_v5 = vld [vmem:[#allocation8 + $0x50] sm:$0xff]  }
 0x202   :  { %v3934_v4 = vld [vmem:[#allocation8 + $0x88] sm:$0xff]  }
 0x204   :  { %2502 = vmatpush1.bf16.msra.mxu0 %v3855_v6  ;;  %2584 = vmatpush1.bf16.msra.mxu1 %v3858_v7  ;;  %v3936_v6 = vld [vmem:[#allocation8 + $0xd0] sm:$0xff]  }
 0x205   :  { %2503 = vmatprep.subr.bf16.mxu0 %v3863_v8  ;;  %2585 = vmatprep.subr.bf16.mxu1 %v3866_v9  ;;  %v3937_v7 = vld [vmem:[#allocation8 + $0x10] sm:$0xff]   ;;  %v3939_v9 = vld [vmem:[#allocation8 + $0x58] sm:$0xff]  }
 0x206   :  { %v3938_v8 = vld [vmem:[#allocation8 + $0x90] sm:$0xff]  }
 0x208   :  { %2504 = vmatpush1.bf16.msra.mxu0 %v3861_v10  ;;  %2586 = vmatpush1.bf16.msra.mxu1 %v3864_v11  ;;  %v3940_v10 = vld [vmem:[#allocation8 + $0xd8] sm:$0xff]  }
 0x209   :  { %2505 = vmatprep.subr.bf16.mxu0 %v3869_v13  ;;  %2587 = vmatprep.subr.bf16.mxu1 %v3872_v14  ;;  %v3941_v11 = vld [vmem:[#allocation8 + $0x18] sm:$0xff]   ;;  %v3943_v14 = vld [vmem:[#allocation8 + $0x60] sm:$0xff]  }
 0x20a   :  { %v3942_v13 = vld [vmem:[#allocation8 + $0x98] sm:$0xff]  }
 0x20c   :  { %2506 = vmatpush1.bf16.msra.mxu0 %v3867_v15  ;;  %2588 = vmatpush1.bf16.msra.mxu1 %v3870_v16  ;;  %v3944_v15 = vld [vmem:[#allocation8 + $0xe0] sm:$0xff]  }
 0x20d   :  { %2507 = vmatprep.subr.bf16.mxu0 %v3875_v17  ;;  %2589 = vmatprep.subr.bf16.mxu1 %v3878_v18  ;;  %v3945_v16 = vld [vmem:[#allocation8 + $0x20] sm:$0xff]   ;;  %v3947_v18 = vld [vmem:[#allocation8 + $0x68] sm:$0xff]  }
 0x20e   :  { %v3946_v17 = vld [vmem:[#allocation8 + $0xa0] sm:$0xff]  }
 0x210   :  { %2508 = vmatpush1.bf16.msra.mxu0 %v3873_v20  ;;  %2590 = vmatpush1.bf16.msra.mxu1 %v3876_v21  ;;  %v3948_v20 = vld [vmem:[#allocation8 + $0xe8] sm:$0xff]  }
 0x211   :  { %2509 = vmatprep.subr.bf16.mxu0 %v3881_v23  ;;  %2591 = vmatprep.subr.bf16.mxu1 %v3884_v24  ;;  %v3949_v21 = vld [vmem:[#allocation8 + $0x28] sm:$0xff]   ;;  %v3951_v24 = vld [vmem:[#allocation8 + $0x70] sm:$0xff]  }
 0x212   :  { %v3950_v23 = vld [vmem:[#allocation8 + $0xa8] sm:$0xff]  }
 0x214   :  { %2510 = vmatpush1.bf16.msra.mxu0 %v3879_v25  ;;  %2592 = vmatpush1.bf16.msra.mxu1 %v3882_v26  ;;  %v3952_v25 = vld [vmem:[#allocation8 + $0xf0] sm:$0xff]  }
 0x215   :  { %2511 = vmatprep.subr.bf16.mxu0 %v3887_v27  ;;  %2593 = vmatprep.subr.bf16.mxu1 %v3890_v28  ;;  %v3953_v26 = vld [vmem:[#allocation8 + $0x30] sm:$0xff]   ;;  %v3955_v28 = vld [vmem:[#allocation8 + $0x78] sm:$0xff]  }
 0x216   :  { %v3954_v27 = vld [vmem:[#allocation8 + $0xb0] sm:$0xff]  }
 0x218   :  { %2512 = vmatpush1.bf16.msra.mxu0 %v3885_v29  ;;  %2594 = vmatpush1.bf16.msra.mxu1 %v3888_v12  ;;  %v3956_v29 = vld [vmem:[#allocation8 + $0xf8] sm:$0xff]  }
 0x219   :  { %2513 = vmatprep.subr.bf16.mxu0 %v3893_v30  ;;  %2595 = vmatprep.subr.bf16.mxu1 %v3896_v35  ;;  %v3957_v12 = vld [vmem:[#allocation8 + $0x38] sm:$0xff]   ;;  %v1790_v35 = vld [vmem:[%s4262_s4] sm:$0xf] }
 0x21a   :  { %v3958_v30 = vld [vmem:[#allocation8 + $0xb8] sm:$0xff]  }
 0x21c   :  { %2514 = vmatpush1.bf16.msra.mxu0 %v3891_v22  ;;  %2596 = vmatpush1.bf16.msra.mxu1 %v3894_v36  ;;  %v1795_v22 = vrot.slane %v1790_v35, %v283_v31  ;;  %v1803_v36 = vrot.slane %v1790_v35, %v291_v45 }
 0x21d   :  { %2515 = vmatprep.subr.bf16.mxu0 %v3899_v37  ;;  %2597 = vmatprep.subr.bf16.mxu1 %v3902_v39  ;;  %v1799_v37 = vrot.slane %v1790_v35, %v287_v33  ;;  %v1807_v39 = vrot.slane %v1790_v35, %v295_v34 }
 0x220   :  { %2516 = vmatpush1.bf16.msra.mxu0 %v3897_v19  ;;  %2598 = vmatpush1.bf16.msra.mxu1 %v3900_v49 }
 0x221   :  { %2517 = vmatprep.subr.bf16.mxu0 %v3905_v40  ;;  %2599 = vmatprep.subr.bf16.mxu1 %v3908_v41 }
 0x224   :  { %2518 = vmatpush1.bf16.msra.mxu0 %v3903_v43  ;;  %2600 = vmatpush1.bf16.msra.mxu1 %v3906_v44 }
 0x225   :  { %2519 = vmatprep.subr.bf16.mxu0 %v3911_v46  ;;  %2601 = vmatprep.subr.bf16.mxu1 %v3914_v47 }
 0x228   :  { %2520 = vmatpush1.bf16.msra.mxu0 %v3909_v48  ;;  %2602 = vmatpush1.bf16.msra.mxu1 %v3912_v50 }
 0x229   :  { %2521 = vmatprep.subr.bf16.mxu0 %v3917_v52  ;;  %2603 = vmatprep.subr.bf16.mxu1 %v3920_v53 }
 0x22c   :  { %2522 = vmatpush1.bf16.msra.mxu0 %v3915_v54  ;;  %2604 = vmatpush1.bf16.msra.mxu1 %v3918_v55 }
 0x22d   :  { %2523 = vmatprep.subr.bf16.mxu0 %v3923_v57  ;;  %2605 = vmatprep.subr.bf16.mxu1 %v3926_v58  ;;  %v3311_v58 = vld [vmem:[%s4264_s6] ss:$0 sm:$0xff] }
 0x230   :  { %2524 = vmatpush1.bf16.msra.mxu0 %v3921_v59  ;;  %2606 = vmatpush1.bf16.msra.mxu1 %v3924_v60 }
 0x231   :  { %3344 = vmatprep.subr.bf16.mxu0 %v3927_v32  ;;  %3366 = vmatprep.subr.bf16.mxu1 %v3928_v62 }
 0x233   :  { %2526 = vmatmul.mubr.bf16.vlgmr.msra.gmra.mrb[4].mxu0 %v1660_v1  ;;  %2608 = vmatmul.mubr.bf16.vlgmr.msra.gmra.mrb[4].mxu1 %v1660_v1 }
 0x234   :  { %3345 = vmatpush3.bf16.msra.mxu0 %v3929_v63  ;;  %3367 = vmatpush3.bf16.msra.mxu1 %v3930_v0 }
 0x235   :  { %3346 = vmatprep.subr.bf16.mxu0 %v3931_v38  ;;  %3368 = vmatprep.subr.bf16.mxu1 %v3932_v2 }
 0x238   :  { %3347 = vmatpush3.bf16.msra.mxu0 %v3933_v3  ;;  %3369 = vmatpush3.bf16.msra.mxu1 %v3934_v4 }
 0x239   :  { %3348 = vmatprep.subr.bf16.mxu0 %v3935_v5  ;;  %3370 = vmatprep.subr.bf16.mxu1 %v3936_v6 }
 0x23c   :  { %3349 = vmatpush3.bf16.msra.mxu0 %v3937_v7  ;;  %3371 = vmatpush3.bf16.msra.mxu1 %v3938_v8 }
 0x23d   :  { %3350 = vmatprep.subr.bf16.mxu0 %v3939_v9  ;;  %3372 = vmatprep.subr.bf16.mxu1 %v3940_v10 }
 0x240   :  { %3351 = vmatpush3.bf16.msra.mxu0 %v3941_v11  ;;  %3373 = vmatpush3.bf16.msra.mxu1 %v3942_v13 }
 0x241   :  { %3352 = vmatprep.subr.bf16.mxu0 %v3943_v14  ;;  %3374 = vmatprep.subr.bf16.mxu1 %v3944_v15 }
 0x244   :  { %3353 = vmatpush3.bf16.msra.mxu0 %v3945_v16  ;;  %3375 = vmatpush3.bf16.msra.mxu1 %v3946_v17 }
 0x245   :  { %3354 = vmatprep.subr.bf16.mxu0 %v3947_v18  ;;  %3376 = vmatprep.subr.bf16.mxu1 %v3948_v20 }
 0x248   :  { %3355 = vmatpush3.bf16.msra.mxu0 %v3949_v21  ;;  %3377 = vmatpush3.bf16.msra.mxu1 %v3950_v23 }
 0x249   :  { %3356 = vmatprep.subr.bf16.mxu0 %v3951_v24  ;;  %3378 = vmatprep.subr.bf16.mxu1 %v3952_v25 }
 0x24c   :  { %3357 = vmatpush3.bf16.msra.mxu0 %v3953_v26  ;;  %3379 = vmatpush3.bf16.msra.mxu1 %v3954_v27 }
 0x24d   :  { %3358 = vmatprep.subr.bf16.mxu0 %v3955_v28  ;;  %3380 = vmatprep.subr.bf16.mxu1 %v3956_v29 }
 0x250   :  { %3359 = vmatpush3.bf16.msra.mxu0 %v3957_v12  ;;  %3381 = vmatpush3.bf16.msra.mxu1 %v3958_v30 }
 0x306   :  { %v2527_v19 = vpop.f32.mrb[4].mxu0  ;;  %v2609_v49 = vpop.f32.mrb[4].mxu1 }
 0x307   :  { %v3392_v40 = vadd.f32 %v2527_v19, %v1795_v22  ;;  %v3394_v41 = vadd.f32 %v2609_v49, %v1803_v36  ;;  %v2529_v43 = vpop.f32.mrb[5].mxu0  ;;  %v2611_v44 = vpop.f32.mrb[5].mxu1 }
 0x308   :  { %v3393_v46 = vadd.f32 %v2529_v43, %v1799_v37  ;;  %v3395_v47 = vadd.f32 %v2611_v44, %v1807_v39  ;;  %v2531_v48 = vpop.f32.mrb[6].mxu0  ;;  %v2613_v50 = vpop.f32.mrb[6].mxu1 }
 0x309   :  { %v2616_v31 = vmax.f32 %v3392_v40, 0.0  ;;  %v2618_v51 = vmax.f32 %v3394_v41, 0.0  ;;  %v2532_v52 = vpop.f32.mrb[7].mxu0  ;;  %v2614_v45 = vpop.f32.mrb[7].mxu1 }
 0x30a   :  { %v2617_v53 = vmax.f32 %v3393_v46, 0.0  ;;  %v2619_v54 = vmax.f32 %v3395_v47, 0.0 }
 0x30b   :  { %v2620_v42 = vpack.c.bf16 %v2616_v31, %v2616_v31  ;;  %v2622_v34 = vpack.c.bf16 %v2618_v51, %v2618_v51 }
 0x30c   :  { %v2621_v33 = vpack.c.bf16 %v2617_v53, %v2617_v53  ;;  %v2623_v55 = vpack.c.bf16 %v2619_v54, %v2619_v54 }
 0x30e   :  { %2919 = vmatprep.mubr.bf16.mxu0 %v2621_v33  ;;  %2959 = vmatprep.mubr.bf16.mxu1 %v2623_v55 }
 0x30f   :  { %2920 = vmatmul.mubr.bf16.vlgmr.msra.gmra.mrb[8].mxu0 %v2620_v42  ;;  %2960 = vmatmul.mubr.bf16.vlgmr.msra.gmra.mrb[8].mxu1 %v2622_v34 }
 0x3e2   :  { %v3360_v56 = vpop.f32.mrb[8].mxu0  ;;  %v3382_v57 = vpop.f32.mrb[8].mxu1 }
 0x3e3   :  { %v3361_v59 = vpop.f32.mrb[9].mxu0  ;;  %v3383_v60 = vpop.f32.mrb[9].mxu1 }
 0x3e4   :  { %v3362_v61 = vadd.f32 %v3361_v59, %v3360_v56  ;;  %v3384_v32 = vadd.f32 %v3383_v60, %v3382_v57  ;;  %v3363_v62 = vpop.f32.mrb[10].mxu0  ;;  %v3385_v63 = vpop.f32.mrb[10].mxu1 }
 0x3e5   :  { %v3364_v0 = vpop.f32.mrb[11].mxu0  ;;  %v3386_v1 = vpop.f32.mrb[11].mxu1 }
 0x3e6   :  { %v2922_v38 = vadd.f32 %v3362_v61, %v3311_v58 }
 0x3e8   :  { %v2962_v2 = vadd.f32 %v3384_v32, %v2922_v38 }
 0x3ea   :  { %2967 = vst [vmem:[#allocation10] sm:$0x7] %v2962_v2 }
 0x3eb   :  { %4058 = shalt.err (!%p4055_p8)
}
 0x3ec   :  { %s4059_s10 = scalar_lea.hbm %s4265_s7, 64 }
 0x3ed   :  { %p4060_p9 = scmp.ne.s32.totalorder %s4265_s7, %s4059_s10  ;;  %p4063_p10 = scmp.lt.u32.totalorder %s4059_s10, %s4265_s7 }
 0x3ef   :  { %p4065_p11 = pnand %p4063_p10, %p4060_p9 }
 0x3f1   :  { %4068 = shalt.err (!%p4065_p11)
}
 0x3f2   :  { %2977 = dma.vmem_to_hbm [thread:$0]  %s2975_s30, 64, %s4265_s7, [#allocation4]  }
 0x3f3   :  { %4075 = dma.done.wait [#allocation4], 64  }
 0x3f4   :  { %4076 = vsyncadd [#allocation4], 4294967232 }
 0x3f5   :  { %2981 = vsyncpa [#allocation3], 1 }
 0x3f6   :  { %2982 = vsyncpa [#allocation6], 1 }
 0x3f7   :  { %2983 = vsyncpa [#allocation9], 1 }
 0x3f8   :  { %2984 = vsyncpa [#allocation4], 1 }

</bundles_post_ra>
